<compile_context>
chip_gen: v6e
topology: v6e:2x2x1
jax: 0.10.0
libtpu: 0.0.40
codegen_flags: <defaults>
</compile_context>

<pallas_src>
import functools

import jax
import jax.numpy as jnp
from jax.experimental import pallas as pl
from jax.experimental.pallas import tpu as pltpu

NUM_LAYERS = 3
BN_EPS = 1e-5
LANE = 128
SUBLANE = 8


def _round_up(v, m):
    return (v + m - 1) // m * m


def _physical_vmem_bytes():
    """Per-TensorCore VMEM (v5e/v6e: 128 MiB, v7x: 64 MiB); conservative fallback."""
    try:
        v = int(pltpu.get_tpu_info().vmem_capacity_bytes)
        if (32 << 20) <= v <= (256 << 20):
            return v
    except Exception:
        pass
    return 64 << 20


def _pad2(a, rows, cols, dtype=jnp.float32):
    a = a.astype(jnp.float32)
    return jnp.pad(a, ((0, rows - a.shape[0]), (0, cols - a.shape[1]))).astype(dtype)


# ------------------------------------------------------------------ tiled-path kernels

def _linear_dual_kernel(x_ref, w_ref, b_ref, h_out_ref, msg_out_ref):
    # One (TM, C_in) row tile: h = x @ w + b; also emit the ReLU'd bf16 copy that the
    # next layer's aggregation matmul consumes (avoids re-ReLU/cast of the resident h).
    h = jnp.dot(x_ref[...], w_ref[...], preferred_element_type=jnp.float32) + b_ref[...]
    h_out_ref[...] = h.astype(h_out_ref.dtype)
    msg_out_ref[...] = jnp.maximum(h, 0.0).astype(msg_out_ref.dtype)


def _gine_layer_kernel(adj_ref, h_ref, msg_ref, eps_ref, w1_ref, b1_ref, w2_ref, b2_ref,
                       h_out_ref, msg_out_ref):
    """One GINE layer for one dst-node row tile.

    adj_ref : (TM, Ns)  int8   A[dst, src] row tile (streamed, upcast to bf16 after DMA)
    h_ref   : (TM, H)   f32    this dst tile of the previous features (self term)
    msg_ref : (Ns, H)   bf16   resident ReLU'd previous features (aggregation operand)
    eps_ref : (1, H)    f32    (1 + eps_layer) broadcast row
    w1/b1   : (H, 2H) bf16 / (1, 2H) f32
    w2/b2   : (2H, H) bf16 / (1, H)  f32   (eval-mode BatchNorm folded in)
    outputs : h_new f32 tile and its bf16 copy (already ReLU'd -> next layer's msg)
    """
    f32, bf16 = jnp.float32, jnp.bfloat16
    a = adj_ref[...].astype(bf16)                                       # int8 -> bf16
    agg = jnp.dot(a, msg_ref[...], preferred_element_type=f32)          # (TM, H)
    z = eps_ref[...] * h_ref[...] + agg                                 # (1+eps)*h + agg
    z1 = jnp.maximum(
        jnp.dot(z.astype(bf16), w1_ref[...], preferred_element_type=f32) + b1_ref[...],
        0.0)
    h_new = jnp.maximum(
        jnp.dot(z1.astype(bf16), w2_ref[...], preferred_element_type=f32) + b2_ref[...],
        0.0)                                     # BN folded into w2/b2; ReLU after BN
    h_out_ref[...] = h_new.astype(h_out_ref.dtype)
    msg_out_ref[...] = h_new.astype(msg_out_ref.dtype)   # already non-negative


def _pool_final_kernel(pool_ref, hb_ref, wf_ref, bfin_ref, out_ref, acc_ref):
    # global_mean_pool accumulated over node chunks (bf16 operands, f32 accumulator),
    # followed by lin_final on the last chunk.
    k = pl.program_id(0)

    @pl.when(k == 0)
    def _():
        acc_ref[...] = jnp.zeros_like(acc_ref)

    acc_ref[...] += jnp.dot(pool_ref[...], hb_ref[...],
                            preferred_element_type=jnp.float32)

    @pl.when(k == pl.num_programs(0) - 1)
    def _():
        out_ref[...] = (jnp.dot(acc_ref[...], wf_ref[...],
                                preferred_element_type=jnp.float32)
                        + bfin_ref[...]).astype(out_ref.dtype)


# ------------------------------------------------------------------ fused-path kernel

def _fused_kernel(adj_ref, x_ref, w0_ref, b0_ref, eps_ref, w1_ref, b1_ref, w2_ref,
                  b2_ref, pool_ref, wf_ref, bfin_ref, out_ref, *, num_layers):
    # Whole network in one kernel for VMEM-resident graphs: adjacency read once,
    # no per-layer HBM round trips or launch overhead.
    f32, bf16 = jnp.float32, jnp.bfloat16
    adj = adj_ref[...].astype(bf16)                                     # int8 -> bf16 once
    h = jnp.dot(x_ref[...], w0_ref[...], preferred_element_type=f32) + b0_ref[...]
    for i in range(num_layers):
        msg = jnp.maximum(h, 0.0).astype(bf16)
        agg = jnp.dot(adj, msg, preferred_element_type=f32)
        z = eps_ref[i] * h + agg
        z1 = jnp.maximum(
            jnp.dot(z.astype(bf16), w1_ref[i], preferred_element_type=f32) + b1_ref[i],
            0.0)
        h = jnp.maximum(
            jnp.dot(z1.astype(bf16), w2_ref[i], preferred_element_type=f32) + b2_ref[i],
            0.0)
    pooled = jnp.dot(pool_ref[...], h.astype(bf16), preferred_element_type=f32)
    out_ref[...] = (jnp.dot(pooled, wf_ref[...], preferred_element_type=f32)
                    + bfin_ref[...]).astype(out_ref.dtype)


# ------------------------------------------------------------------ wrappers

def _forward_fused(x, adj_i8, pool, params, w2_fused, b2_fused, one_plus_eps,
                   num_graphs, vmem_limit):
    f32, bf16 = jnp.float32, jnp.bfloat16
    n, c_in = x.shape
    L, hidden, h2 = params["w1"].shape
    c_out = params["w_final"].shape[1]
    h_pad, h2_pad = _round_up(hidden, LANE), _round_up(h2, LANE)
    c_in_pad, c_out_pad = _round_up(c_in, LANE), _round_up(c_out, LANE)
    g_pad = _round_up(num_graphs, SUBLANE)
    n_pad = _round_up(n, LANE)

    adj_p = jnp.pad(adj_i8, ((0, n_pad - n), (0, n_pad - n)))
    pool_p = jnp.pad(pool, ((0, g_pad - pool.shape[0]), (0, n_pad - n))).astype(bf16)
    x_p = _pad2(x, n_pad, c_in_pad, bf16)
    w0_p = _pad2(params["w_init"], c_in_pad, h_pad, bf16)
    b0_p = _pad2(params["b_init"], 1, h_pad)
    eps_p = jnp.broadcast_to(one_plus_eps, (L, 1, h_pad)).astype(f32)
    w1_p = jnp.stack([_pad2(params["w1"][i], h_pad, h2_pad, bf16) for i in range(L)])
    b1_p = jnp.stack([_pad2(params["b1"][i], 1, h2_pad) for i in range(L)])
    w2_p = jnp.stack([_pad2(w2_fused[i], h2_pad, h_pad, bf16) for i in range(L)])
    b2_p = jnp.stack([_pad2(b2_fused[i], 1, h_pad) for i in range(L)])
    wf_p = _pad2(params["w_final"], h_pad, c_out_pad)
    bf_p = _pad2(params["b_final"], 1, c_out_pad)

    vmem = pl.BlockSpec(memory_space=pltpu.MemorySpace.VMEM)
    out = pl.pallas_call(
        functools.partial(_fused_kernel, num_layers=L),
        out_shape=jax.ShapeDtypeStruct((g_pad, c_out_pad), f32),
        in_specs=[vmem] * 12,
        out_specs=vmem,
        compiler_params=pltpu.CompilerParams(vmem_limit_bytes=vmem_limit),
    )(adj_p, x_p, w0_p, b0_p, eps_p, w1_p, b1_p, w2_p, b2_p, pool_p, wf_p, bf_p)
    return out[:num_graphs, :c_out]


def _forward_tiled(x, adj_i8, pool, params, w2_fused, b2_fused, one_plus_eps,
                   num_graphs, row_tile, single_buffer, cap):
    f32, bf16 = jnp.float32, jnp.bfloat16
    n, c_in = x.shape
    L, hidden, h2 = params["w1"].shape
    c_out = params["w_final"].shape[1]
    h_pad, h2_pad = _round_up(hidden, LANE), _round_up(h2, LANE)
    c_in_pad, c_out_pad = _round_up(c_in, LANE), _round_up(c_out, LANE)
    g_pad = _round_up(num_graphs, SUBLANE)

    # src/K dimension padded only to a lane multiple; dst rows padded to a tm multiple.
    n_cols_pad = _round_up(n, LANE)
    tm = min(_round_up(row_tile, LANE), n_cols_pad)
    inv_copies = 1 if single_buffer else 2

    def layer_vmem(tm_):
        return (4 * tm_ * n_cols_pad                        # int8 adj (x2 bufs) + bf16 upcast
                + n_cols_pad * h_pad * 2 * inv_copies       # resident bf16 msg
                + 2 * tm_ * h_pad * 4                       # h self-term tile (x2 bufs)
                + 2 * tm_ * h_pad * 6                       # h + msg output tiles (x2 bufs)
                + tm_ * h2_pad * 4                          # z1 temporary
                + (h_pad * h2_pad + h2_pad * h_pad) * 2 * inv_copies  # w1, w2 (bf16)
                + (h2_pad + 2 * h_pad) * 4 * inv_copies     # biases + eps rows
                + (4 << 20))                                # Mosaic internal scratch / slack

    while tm > LANE and layer_vmem(tm) > cap:               # adaptive tm (v7x 64 MiB VMEM)
        tm = max(LANE, (tm // 2 // LANE) * LANE)
    n_rows_pad = _round_up(n, tm)
    n_tiles = n_rows_pad // tm
    vmem_limit = int(min(max(layer_vmem(tm), 32 << 20), cap))

    adj_p = jnp.pad(adj_i8, ((0, n_rows_pad - n), (0, n_cols_pad - n)))
    pool_p = jnp.pad(pool, ((0, g_pad - pool.shape[0]), (0, n_cols_pad - n))).astype(bf16)
    x_p = _pad2(x, n_rows_pad, c_in_pad, bf16)
    w0_p = _pad2(params["w_init"], c_in_pad, h_pad, bf16)
    b0_p = _pad2(params["b_init"], 1, h_pad)
    wf_p = _pad2(params["w_final"], h_pad, c_out_pad)
    bf_p = _pad2(params["b_final"], 1, c_out_pad)

    def inv_spec(shape):
        # Invariant operand: constant block index; single-buffered when supported.
        if single_buffer:
            return pl.BlockSpec(shape, lambda *_: (0,) * len(shape),
                                pipeline_mode=pl.Buffered(1))
        return pl.BlockSpec(shape, lambda *_: (0,) * len(shape))

    cparams = pltpu.CompilerParams(dimension_semantics=("parallel",),
                                   vmem_limit_bytes=vmem_limit)

    # ---- h0 = lin_init(x): dual output (f32 h, bf16 ReLU'd msg), row-tiled ----
    h_cur, msg_cur = pl.pallas_call(
        _linear_dual_kernel,
        out_shape=(jax.ShapeDtypeStruct((n_rows_pad, h_pad), f32),
                   jax.ShapeDtypeStruct((n_rows_pad, h_pad), bf16)),
        grid=(n_tiles,),
        in_specs=[pl.BlockSpec((tm, c_in_pad), lambda i: (i, 0)),
                  inv_spec((c_in_pad, h_pad)),
                  inv_spec((1, h_pad))],
        out_specs=(pl.BlockSpec((tm, h_pad), lambda i: (i, 0)),
                   pl.BlockSpec((tm, h_pad), lambda i: (i, 0))),
        compiler_params=cparams,
    )(x_p, w0_p, b0_p)

    # ---- GINE layers: one pallas_call per layer, grid over dst row tiles ----
    for i in range(L):
        w1_i = _pad2(params["w1"][i], h_pad, h2_pad, bf16)
        b1_i = _pad2(params["b1"][i], 1, h2_pad)
        w2_i = _pad2(w2_fused[i], h2_pad, h_pad, bf16)
        b2_i = _pad2(b2_fused[i], 1, h_pad)
        eps_i = jnp.broadcast_to(one_plus_eps[i], (1, h_pad)).astype(f32)
        h_cur, msg_cur = pl.pallas_call(
            _gine_layer_kernel,
            out_shape=(jax.ShapeDtypeStruct((n_rows_pad, h_pad), f32),
                       jax.ShapeDtypeStruct((n_rows_pad, h_pad), bf16)),
            grid=(n_tiles,),
            in_specs=[
                pl.BlockSpec((tm, n_cols_pad), lambda t: (t, 0)),   # int8 adj row tile
                pl.BlockSpec((tm, h_pad), lambda t: (t, 0)),        # f32 h self-term tile
                inv_spec((n_cols_pad, h_pad)),                      # resident bf16 msg
                inv_spec((1, h_pad)),                               # (1 + eps)
                inv_spec((h_pad, h2_pad)), inv_spec((1, h2_pad)),   # w1, b1
                inv_spec((h2_pad, h_pad)), inv_spec((1, h_pad)),    # w2, b2 (BN folded)
            ],
            out_specs=(pl.BlockSpec((tm, h_pad), lambda t: (t, 0)),
                       pl.BlockSpec((tm, h_pad), lambda t: (t, 0))),
            compiler_params=cparams,
        )(adj_p, h_cur, msg_cur, eps_i, w1_i, b1_i, w2_i, b2_i)
    # (the final f32 h is unused; the bf16 copy == ReLU'd h feeds the pooling matmul)

    # ---- global_mean_pool + lin_final, tiled over node chunks with f32 accumulator ----
    tk_n = LANE
    for cand in (2048, 1024, 512, 256):
        if n_cols_pad % cand == 0:
            tk_n = cand
            break
    out = pl.pallas_call(
        _pool_final_kernel,
        out_shape=jax.ShapeDtypeStruct((g_pad, c_out_pad), f32),
        grid=(n_cols_pad // tk_n,),
        in_specs=[pl.BlockSpec((g_pad, tk_n), lambda k: (0, k)),    # pool chunk (bf16)
                  pl.BlockSpec((tk_n, h_pad), lambda k: (k, 0)),    # h chunk (bf16)
                  inv_spec((h_pad, c_out_pad)),
                  inv_spec((1, c_out_pad))],
        out_specs=pl.BlockSpec((g_pad, c_out_pad), lambda k: (0, 0)),
        scratch_shapes=[pltpu.VMEM((g_pad, h_pad), f32)],
        compiler_params=pltpu.CompilerParams(dimension_semantics=("arbitrary",),
                                             vmem_limit_bytes=vmem_limit),
    )(pool_p, msg_cur, wf_p, bf_p)
    return out[:num_graphs, :c_out]


def graph_net_forward(params, x, edge_index, batch, num_graphs, row_tile=256,
                      force_path=None, single_buffer_invariants=True):
    """Pallas-backed eval-mode forward.

    x:[N,C_in] f32, edge_index:[2,E] i32, batch:[N] i32 -> [num_graphs, C_out] f32.
    """
    f32 = jnp.float32
    n, c_in = x.shape
    hidden = params["w_init"].shape[1]
    h2 = params["w1"].shape[2]
    c_out = params["w_final"].shape[1]
    L = params["w1"].shape[0]

    # ---- glue built once: int8 adjacency counts A[dst, src] and mean-pool matrix ----
    src, dst = edge_index[0], edge_index[1]
    adj_i8 = jnp.zeros((n, n), jnp.int32).at[dst, src].add(1).astype(jnp.int8)
    onehot = (batch[None, :] ==
              jnp.arange(num_graphs, dtype=batch.dtype)[:, None]).astype(f32)
    pool = onehot / jnp.maximum(onehot.sum(axis=1, keepdims=True), 1.0)

    # ---- fold eval-mode BatchNorm into the second GIN linear ----
    scale = params["bn_gamma"] * jax.lax.rsqrt(params["bn_var"] + BN_EPS)   # (L,1,H)
    w2_fused = params["w2"] * scale                                         # (L,2H,H)
    b2_fused = (params["b2"] - params["bn_mean"]) * scale + params["bn_beta"]
    one_plus_eps = (1.0 + params["eps"]).astype(f32)[:, None, None]         # (L,1,1)

    # ---- per-generation VMEM budget ----
    phys = _physical_vmem_bytes()                 # 64 MiB (v7x) .. 128 MiB (v5e/v6e)
    cap = phys - max(phys // 8, 8 << 20)          # ~56 MiB v7x, ~112 MiB v5e/v6e

    # ---- path selection: fully-fused single kernel when the graph fits in VMEM ----
    h_pad, h2_pad = _round_up(hidden, LANE), _round_up(h2, LANE)
    c_in_pad, c_out_pad = _round_up(c_in, LANE), _round_up(c_out, LANE)
    g_pad = _round_up(num_graphs, SUBLANE)
    n_pad = _round_up(n, LANE)
    fused_est = (3 * n_pad * n_pad                                   # adj int8 + bf16 upcast
                 + n_pad * (c_in_pad * 2 + h_pad * 12 + h2_pad * 6)  # x/h/msg/z/z1 temps
                 + g_pad * n_pad * 2 + g_pad * (h_pad + c_out_pad) * 4
                 + L * (h_pad * h2_pad + h2_pad * h_pad) * 2
                 + L * (2 * h_pad + h2_pad) * 4
                 + c_in_pad * h_pad * 2
                 + (h_pad * c_out_pad + h_pad + c_out_pad) * 4
                 + (6 << 20))
    use_fused = force_path == "fused" or (force_path is None and fused_est <= cap)

    if use_fused:
        vmem_limit = int(min(max(fused_est, 32 << 20), cap))
        return _forward_fused(x, adj_i8, pool, params, w2_fused, b2_fused,
                              one_plus_eps, num_graphs, vmem_limit)
    return _forward_tiled(x, adj_i8, pool, params, w2_fused, b2_fused, one_plus_eps,
                          num_graphs, row_tile, single_buffer_invariants, cap)


# ------------------------------------------------------------------ reference

def graph_net_reference(params, x, edge_index, batch, num_graphs):
    """Pure-JAX f32 reference mirroring the PyTorch forward (eval mode)."""
    src, dst = edge_index[0], edge_index[1]
    h = x @ params["w_init"] + params["b_init"]
    for i in range(NUM_LAYERS):
        msg = jnp.maximum(h[src], 0.0)
        agg = jnp.zeros_like(h).at[dst].add(msg)
        z = (1.0 + params["eps"][i]) * h + agg
        z1 = jnp.maximum(z @ params["w1"][i] + params["b1"][i], 0.0)
        h = z1 @ params["w2"][i] + params["b2"][i]
        h = (h - params["bn_mean"][i]) * jax.lax.rsqrt(params["bn_var"][i] + BN_EPS)
        h = h * params["bn_gamma"][i] + params["bn_beta"][i]
        h = jnp.maximum(h, 0.0)
    onehot = (batch[None, :] ==
              jnp.arange(num_graphs, dtype=batch.dtype)[:, None]).astype(h.dtype)
    pooled = (onehot @ h) / jnp.maximum(onehot.sum(axis=1, keepdims=True), 1.0)
    return pooled @ params["w_final"] + params["b_final"]


def init_params(key, in_channels, hidden, out_channels, num_layers=NUM_LAYERS):
    f32 = jnp.float32
    ks = jax.random.split(key, 12)

    def u(k, shape, scale):
        return jax.random.uniform(k, shape, f32, -scale, scale)

    h = hidden
    return dict(
        w_init=u(ks[0], (in_channels, h), 1.0 / in_channels ** 0.5),
        b_init=u(ks[1], (1, h), 1.0 / in_channels ** 0.5),
        eps=jnp.zeros((num_layers,), f32),
        w1=u(ks[2], (num_layers, h, 2 * h), 1.0 / h ** 0.5),
        b1=u(ks[3], (num_layers, 1, 2 * h), 1.0 / h ** 0.5),
        w2=u(ks[4], (num_layers, 2 * h, h), 1.0 / (2 * h) ** 0.5),
        b2=u(ks[5], (num_layers, 1, h), 1.0 / (2 * h) ** 0.5),
        bn_gamma=jax.random.uniform(ks[6], (num_layers, 1, h), f32, 0.5, 1.5),
        bn_beta=u(ks[7], (num_layers, 1, h), 0.5),
        bn_mean=u(ks[8], (num_layers, 1, h), 0.5),
        bn_var=jax.random.uniform(ks[9], (num_layers, 1, h), f32, 0.5, 1.5),
        w_final=u(ks[10], (h, out_channels), 1.0 / h ** 0.5),
        b_final=u(ks[11], (1, out_channels), 1.0 / h ** 0.5),
    )


if __name__ == "__main__":
    IN_CHANNELS, HIDDEN, OUT_CHANNELS = 8, 32, 4
    N_NODES, N_EDGES_PER_GRAPH, N_GRAPHS = 16, 20, 2

    key = jax.random.PRNGKey(0)
    k_x, k_e0, k_e1, k_p = jax.random.split(key, 4)

    x = jax.random.normal(k_x, (N_NODES, IN_CHANNELS), jnp.float32)

    # Two graphs: nodes 0..7 and 8..15, edges stay within each graph.
    e0 = jax.random.randint(k_e0, (2, N_EDGES_PER_GRAPH), 0, 8, jnp.int32)
    e1 = jax.random.randint(k_e1, (2, N_EDGES_PER_GRAPH), 0, 8, jnp.int32) + 8
    edge_index = jnp.concatenate([e0, e1], axis=1)                      # (2, 40)
    batch = jnp.concatenate([jnp.zeros(8, jnp.int32), jnp.ones(8, jnp.int32)])

    params = init_params(k_p, IN_CHANNELS, HIDDEN, OUT_CHANNELS)
    ref = graph_net_reference(params, x, edge_index, batch, N_GRAPHS)

    # Auto path (fused single-kernel for this VMEM-resident graph).
    fwd = jax.jit(functools.partial(graph_net_forward, num_graphs=N_GRAPHS))
    out = jax.block_until_ready(fwd(params, x, edge_index, batch))
    assert out.shape == (N_GRAPHS, OUT_CHANNELS)
    # bf16 MXU operands (f32 accumulation) vs f32 reference -> slightly relaxed tol.
    assert jnp.allclose(out, ref, atol=2e-2, rtol=2e-2), (out, ref)

    # Also exercise the row-tiled large-graph path on the same data.
    def _run_tiled(single_buffer):
        f = jax.jit(functools.partial(graph_net_forward, num_graphs=N_GRAPHS,
                                      force_path="tiled",
                                      single_buffer_invariants=single_buffer))
        return jax.block_until_ready(f(params, x, edge_index, batch))

    try:
        out_tiled = _run_tiled(True)
    except Exception:
        # pl.Buffered(1) unsupported on this JAX build -> default double-buffering.
        out_tiled = _run_tiled(False)
    assert jnp.allclose(out_tiled, ref, atol=2e-2, rtol=2e-2), (out_tiled, ref)

    print("KERNEL_OK")
</pallas_src>

<mosaic_0001>
module attributes {stable_mosaic.version = 11 : i64} {
  func.func private @main(%arg0: i32) attributes {dimension_semantics = [#tpu.dimension_semantics<core_parallel>], iteration_bounds = array<i64: 2>, tpu.core_type = #tpu.core_type<sc_scalar_subcore>, window_params = []} {
    return
  }
}

module attributes {stable_mosaic.version = 11 : i64} {
  func.func private @main(%arg0: i32) attributes {dimension_semantics = [#tpu.dimension_semantics<core_parallel>], iteration_bounds = array<i64: 2>, tpu.core_type = #tpu.core_type<sc_scalar_subcore>, window_params = []} {
    return
  }
}

module attributes {stable_mosaic.version = 11 : i64} {
  func.func @_fused_kernel(%arg0: memref<128x128xi8, #tpu.memory_space<vmem>>, %arg1: memref<128x128xbf16, #tpu.memory_space<vmem>>, %arg2: memref<128x128xbf16, #tpu.memory_space<vmem>>, %arg3: memref<1x128xf32, #tpu.memory_space<vmem>>, %arg4: memref<3x1x128xf32, #tpu.memory_space<vmem>>, %arg5: memref<3x128x128xbf16, #tpu.memory_space<vmem>>, %arg6: memref<3x1x128xf32, #tpu.memory_space<vmem>>, %arg7: memref<3x128x128xbf16, #tpu.memory_space<vmem>>, %arg8: memref<3x1x128xf32, #tpu.memory_space<vmem>>, %arg9: memref<8x128xbf16, #tpu.memory_space<vmem>>, %arg10: memref<128x128xf32, #tpu.memory_space<vmem>>, %arg11: memref<1x128xf32, #tpu.memory_space<vmem>>, %arg12: memref<8x128xf32, #tpu.memory_space<vmem>>) attributes {dimension_semantics = [], scalar_prefetch = 0 : i64, scratch_operands = 0 : i64, tpu.core_type = #tpu.core_type<tc>} {
    %c0 = arith.constant 0 : index
    %c0_0 = arith.constant 0 : index
    %0 = vector.load %arg0[%c0, %c0_0] : memref<128x128xi8, #tpu.memory_space<vmem>>, vector<128x128xi8>
    %1 = arith.sitofp %0 : vector<128x128xi8> to vector<128x128xbf16>
    %c0_1 = arith.constant 0 : index
    %c0_2 = arith.constant 0 : index
    %2 = vector.load %arg1[%c0_1, %c0_2] : memref<128x128xbf16, #tpu.memory_space<vmem>>, vector<128x128xbf16>
    %c0_3 = arith.constant 0 : index
    %c0_4 = arith.constant 0 : index
    %3 = vector.load %arg2[%c0_3, %c0_4] : memref<128x128xbf16, #tpu.memory_space<vmem>>, vector<128x128xbf16>
    %cst = arith.constant dense<0.000000e+00> : vector<128x128xf32>
    %4 = tpu.matmul %2, %3, %cst {dimension_numbers = #tpu.dot_dimension_numbers<[1], [0], [0], [1], [0, 0, 1, 1], [], []>} : vector<128x128xbf16>, vector<128x128xbf16>, vector<128x128xf32> -> vector<128x128xf32>
    %c0_5 = arith.constant 0 : index
    %c0_6 = arith.constant 0 : index
    %5 = vector.load %arg3[%c0_5, %c0_6] : memref<1x128xf32, #tpu.memory_space<vmem>>, vector<1x128xf32>
    %6 = vector.broadcast %5 : vector<1x128xf32> to vector<128x128xf32>
    %7 = arith.addf %4, %6 : vector<128x128xf32>
    %cst_7 = arith.constant 0.000000e+00 : f32
    %8 = vector.broadcast %cst_7 : f32 to vector<128x128xf32>
    %9 = arith.maximumf %7, %8 : vector<128x128xf32>
    %10 = arith.truncf %9 : vector<128x128xf32> to vector<128x128xbf16>
    %cst_8 = arith.constant dense<0.000000e+00> : vector<128x128xf32>
    %11 = tpu.matmul %1, %10, %cst_8 {dimension_numbers = #tpu.dot_dimension_numbers<[1], [0], [0], [1], [0, 0, 1, 1], [], []>} : vector<128x128xbf16>, vector<128x128xbf16>, vector<128x128xf32> -> vector<128x128xf32>
    %c0_9 = arith.constant 0 : index
    %c0_10 = arith.constant 0 : index
    %c0_11 = arith.constant 0 : index
    %12 = vector.load %arg4[%c0_9, %c0_10, %c0_11] : memref<3x1x128xf32, #tpu.memory_space<vmem>>, vector<1x1x128xf32>
    %13 = vector.shape_cast %12 : vector<1x1x128xf32> to vector<1x128xf32>
    %14 = vector.broadcast %13 : vector<1x128xf32> to vector<128x128xf32>
    %15 = arith.mulf %14, %7 : vector<128x128xf32>
    %16 = arith.addf %15, %11 : vector<128x128xf32>
    %17 = arith.truncf %16 : vector<128x128xf32> to vector<128x128xbf16>
    %c0_12 = arith.constant 0 : index
    %c0_13 = arith.constant 0 : index
    %c0_14 = arith.constant 0 : index
    %18 = vector.load %arg5[%c0_12, %c0_13, %c0_14] : memref<3x128x128xbf16, #tpu.memory_space<vmem>>, vector<1x128x128xbf16>
    %19 = vector.shape_cast %18 : vector<1x128x128xbf16> to vector<128x128xbf16>
    %cst_15 = arith.constant dense<0.000000e+00> : vector<128x128xf32>
    %20 = tpu.matmul %17, %19, %cst_15 {dimension_numbers = #tpu.dot_dimension_numbers<[1], [0], [0], [1], [0, 0, 1, 1], [], []>} : vector<128x128xbf16>, vector<128x128xbf16>, vector<128x128xf32> -> vector<128x128xf32>
    %c0_16 = arith.constant 0 : index
    %c0_17 = arith.constant 0 : index
    %c0_18 = arith.constant 0 : index
    %21 = vector.load %arg6[%c0_16, %c0_17, %c0_18] : memref<3x1x128xf32, #tpu.memory_space<vmem>>, vector<1x1x128xf32>
    %22 = vector.shape_cast %21 : vector<1x1x128xf32> to vector<1x128xf32>
    %23 = vector.broadcast %22 : vector<1x128xf32> to vector<128x128xf32>
    %24 = arith.addf %20, %23 : vector<128x128xf32>
    %cst_19 = arith.constant 0.000000e+00 : f32
    %25 = vector.broadcast %cst_19 : f32 to vector<128x128xf32>
    %26 = arith.maximumf %24, %25 : vector<128x128xf32>
    %27 = arith.truncf %26 : vector<128x128xf32> to vector<128x128xbf16>
    %c0_20 = arith.constant 0 : index
    %c0_21 = arith.constant 0 : index
    %c0_22 = arith.constant 0 : index
    %28 = vector.load %arg7[%c0_20, %c0_21, %c0_22] : memref<3x128x128xbf16, #tpu.memory_space<vmem>>, vector<1x128x128xbf16>
    %29 = vector.shape_cast %28 : vector<1x128x128xbf16> to vector<128x128xbf16>
    %cst_23 = arith.constant dense<0.000000e+00> : vector<128x128xf32>
    %30 = tpu.matmul %27, %29, %cst_23 {dimension_numbers = #tpu.dot_dimension_numbers<[1], [0], [0], [1], [0, 0, 1, 1], [], []>} : vector<128x128xbf16>, vector<128x128xbf16>, vector<128x128xf32> -> vector<128x128xf32>
    %c0_24 = arith.constant 0 : index
    %c0_25 = arith.constant 0 : index
    %c0_26 = arith.constant 0 : index
    %31 = vector.load %arg8[%c0_24, %c0_25, %c0_26] : memref<3x1x128xf32, #tpu.memory_space<vmem>>, vector<1x1x128xf32>
    %32 = vector.shape_cast %31 : vector<1x1x128xf32> to vector<1x128xf32>
    %33 = vector.broadcast %32 : vector<1x128xf32> to vector<128x128xf32>
    %34 = arith.addf %30, %33 : vector<128x128xf32>
    %cst_27 = arith.constant 0.000000e+00 : f32
    %35 = vector.broadcast %cst_27 : f32 to vector<128x128xf32>
    %36 = arith.maximumf %34, %35 : vector<128x128xf32>
    %cst_28 = arith.constant 0.000000e+00 : f32
    %37 = vector.broadcast %cst_28 : f32 to vector<128x128xf32>
    %38 = arith.maximumf %36, %37 : vector<128x128xf32>
    %39 = arith.truncf %38 : vector<128x128xf32> to vector<128x128xbf16>
    %cst_29 = arith.constant dense<0.000000e+00> : vector<128x128xf32>
    %40 = tpu.matmul %1, %39, %cst_29 {dimension_numbers = #tpu.dot_dimension_numbers<[1], [0], [0], [1], [0, 0, 1, 1], [], []>} : vector<128x128xbf16>, vector<128x128xbf16>, vector<128x128xf32> -> vector<128x128xf32>
    %c1 = arith.constant 1 : index
    %c0_30 = arith.constant 0 : index
    %c0_31 = arith.constant 0 : index
    %41 = vector.load %arg4[%c1, %c0_30, %c0_31] : memref<3x1x128xf32, #tpu.memory_space<vmem>>, vector<1x1x128xf32>
    %42 = vector.shape_cast %41 : vector<1x1x128xf32> to vector<1x128xf32>
    %43 = vector.broadcast %42 : vector<1x128xf32> to vector<128x128xf32>
    %44 = arith.mulf %43, %36 : vector<128x128xf32>
    %45 = arith.addf %44, %40 : vector<128x128xf32>
    %46 = arith.truncf %45 : vector<128x128xf32> to vector<128x128xbf16>
    %c1_32 = arith.constant 1 : index
    %c0_33 = arith.constant 0 : index
    %c0_34 = arith.constant 0 : index
    %47 = vector.load %arg5[%c1_32, %c0_33, %c0_34] : memref<3x128x128xbf16, #tpu.memory_space<vmem>>, vector<1x128x128xbf16>
    %48 = vector.shape_cast %47 : vector<1x128x128xbf16> to vector<128x128xbf16>
    %cst_35 = arith.constant dense<0.000000e+00> : vector<128x128xf32>
    %49 = tpu.matmul %46, %48, %cst_35 {dimension_numbers = #tpu.dot_dimension_numbers<[1], [0], [0], [1], [0, 0, 1, 1], [], []>} : vector<128x128xbf16>, vector<128x128xbf16>, vector<128x128xf32> -> vector<128x128xf32>
    %c1_36 = arith.constant 1 : index
    %c0_37 = arith.constant 0 : index
    %c0_38 = arith.constant 0 : index
    %50 = vector.load %arg6[%c1_36, %c0_37, %c0_38] : memref<3x1x128xf32, #tpu.memory_space<vmem>>, vector<1x1x128xf32>
    %51 = vector.shape_cast %50 : vector<1x1x128xf32> to vector<1x128xf32>
    %52 = vector.broadcast %51 : vector<1x128xf32> to vector<128x128xf32>
    %53 = arith.addf %49, %52 : vector<128x128xf32>
    %cst_39 = arith.constant 0.000000e+00 : f32
    %54 = vector.broadcast %cst_39 : f32 to vector<128x128xf32>
    %55 = arith.maximumf %53, %54 : vector<128x128xf32>
    %56 = arith.truncf %55 : vector<128x128xf32> to vector<128x128xbf16>
    %c1_40 = arith.constant 1 : index
    %c0_41 = arith.constant 0 : index
    %c0_42 = arith.constant 0 : index
    %57 = vector.load %arg7[%c1_40, %c0_41, %c0_42] : memref<3x128x128xbf16, #tpu.memory_space<vmem>>, vector<1x128x128xbf16>
    %58 = vector.shape_cast %57 : vector<1x128x128xbf16> to vector<128x128xbf16>
    %cst_43 = arith.constant dense<0.000000e+00> : vector<128x128xf32>
    %59 = tpu.matmul %56, %58, %cst_43 {dimension_numbers = #tpu.dot_dimension_numbers<[1], [0], [0], [1], [0, 0, 1, 1], [], []>} : vector<128x128xbf16>, vector<128x128xbf16>, vector<128x128xf32> -> vector<128x128xf32>
    %c1_44 = arith.constant 1 : index
    %c0_45 = arith.constant 0 : index
    %c0_46 = arith.constant 0 : index
    %60 = vector.load %arg8[%c1_44, %c0_45, %c0_46] : memref<3x1x128xf32, #tpu.memory_space<vmem>>, vector<1x1x128xf32>
    %61 = vector.shape_cast %60 : vector<1x1x128xf32> to vector<1x128xf32>
    %62 = vector.broadcast %61 : vector<1x128xf32> to vector<128x128xf32>
    %63 = arith.addf %59, %62 : vector<128x128xf32>
    %cst_47 = arith.constant 0.000000e+00 : f32
    %64 = vector.broadcast %cst_47 : f32 to vector<128x128xf32>
    %65 = arith.maximumf %63, %64 : vector<128x128xf32>
    %cst_48 = arith.constant 0.000000e+00 : f32
    %66 = vector.broadcast %cst_48 : f32 to vector<128x128xf32>
    %67 = arith.maximumf %65, %66 : vector<128x128xf32>
    %68 = arith.truncf %67 : vector<128x128xf32> to vector<128x128xbf16>
    %cst_49 = arith.constant dense<0.000000e+00> : vector<128x128xf32>
    %69 = tpu.matmul %1, %68, %cst_49 {dimension_numbers = #tpu.dot_dimension_numbers<[1], [0], [0], [1], [0, 0, 1, 1], [], []>} : vector<128x128xbf16>, vector<128x128xbf16>, vector<128x128xf32> -> vector<128x128xf32>
    %c2 = arith.constant 2 : index
    %c0_50 = arith.constant 0 : index
    %c0_51 = arith.constant 0 : index
    %70 = vector.load %arg4[%c2, %c0_50, %c0_51] : memref<3x1x128xf32, #tpu.memory_space<vmem>>, vector<1x1x128xf32>
    %71 = vector.shape_cast %70 : vector<1x1x128xf32> to vector<1x128xf32>
    %72 = vector.broadcast %71 : vector<1x128xf32> to vector<128x128xf32>
    %73 = arith.mulf %72, %65 : vector<128x128xf32>
    %74 = arith.addf %73, %69 : vector<128x128xf32>
    %75 = arith.truncf %74 : vector<128x128xf32> to vector<128x128xbf16>
    %c2_52 = arith.constant 2 : index
    %c0_53 = arith.constant 0 : index
    %c0_54 = arith.constant 0 : index
    %76 = vector.load %arg5[%c2_52, %c0_53, %c0_54] : memref<3x128x128xbf16, #tpu.memory_space<vmem>>, vector<1x128x128xbf16>
    %77 = vector.shape_cast %76 : vector<1x128x128xbf16> to vector<128x128xbf16>
    %cst_55 = arith.constant dense<0.000000e+00> : vector<128x128xf32>
    %78 = tpu.matmul %75, %77, %cst_55 {dimension_numbers = #tpu.dot_dimension_numbers<[1], [0], [0], [1], [0, 0, 1, 1], [], []>} : vector<128x128xbf16>, vector<128x128xbf16>, vector<128x128xf32> -> vector<128x128xf32>
    %c2_56 = arith.constant 2 : index
    %c0_57 = arith.constant 0 : index
    %c0_58 = arith.constant 0 : index
    %79 = vector.load %arg6[%c2_56, %c0_57, %c0_58] : memref<3x1x128xf32, #tpu.memory_space<vmem>>, vector<1x1x128xf32>
    %80 = vector.shape_cast %79 : vector<1x1x128xf32> to vector<1x128xf32>
    %81 = vector.broadcast %80 : vector<1x128xf32> to vector<128x128xf32>
    %82 = arith.addf %78, %81 : vector<128x128xf32>
    %cst_59 = arith.constant 0.000000e+00 : f32
    %83 = vector.broadcast %cst_59 : f32 to vector<128x128xf32>
    %84 = arith.maximumf %82, %83 : vector<128x128xf32>
    %85 = arith.truncf %84 : vector<128x128xf32> to vector<128x128xbf16>
    %c2_60 = arith.constant 2 : index
    %c0_61 = arith.constant 0 : index
    %c0_62 = arith.constant 0 : index
    %86 = vector.load %arg7[%c2_60, %c0_61, %c0_62] : memref<3x128x128xbf16, #tpu.memory_space<vmem>>, vector<1x128x128xbf16>
    %87 = vector.shape_cast %86 : vector<1x128x128xbf16> to vector<128x128xbf16>
    %cst_63 = arith.constant dense<0.000000e+00> : vector<128x128xf32>
    %88 = tpu.matmul %85, %87, %cst_63 {dimension_numbers = #tpu.dot_dimension_numbers<[1], [0], [0], [1], [0, 0, 1, 1], [], []>} : vector<128x128xbf16>, vector<128x128xbf16>, vector<128x128xf32> -> vector<128x128xf32>
    %c2_64 = arith.constant 2 : index
    %c0_65 = arith.constant 0 : index
    %c0_66 = arith.constant 0 : index
    %89 = vector.load %arg8[%c2_64, %c0_65, %c0_66] : memref<3x1x128xf32, #tpu.memory_space<vmem>>, vector<1x1x128xf32>
    %90 = vector.shape_cast %89 : vector<1x1x128xf32> to vector<1x128xf32>
    %91 = vector.broadcast %90 : vector<1x128xf32> to vector<128x128xf32>
    %92 = arith.addf %88, %91 : vector<128x128xf32>
    %cst_67 = arith.constant 0.000000e+00 : f32
    %93 = vector.broadcast %cst_67 : f32 to vector<128x128xf32>
    %94 = arith.maximumf %92, %93 : vector<128x128xf32>
    %c0_68 = arith.constant 0 : index
    %c0_69 = arith.constant 0 : index
    %95 = vector.load %arg9[%c0_68, %c0_69] : memref<8x128xbf16, #tpu.memory_space<vmem>>, vector<8x128xbf16>
    %96 = arith.truncf %94 : vector<128x128xf32> to vector<128x128xbf16>
    %cst_70 = arith.constant dense<0.000000e+00> : vector<8x128xf32>
    %97 = tpu.matmul %95, %96, %cst_70 {dimension_numbers = #tpu.dot_dimension_numbers<[1], [0], [0], [1], [0, 0, 1, 1], [], []>} : vector<8x128xbf16>, vector<128x128xbf16>, vector<8x128xf32> -> vector<8x128xf32>
    %c0_71 = arith.constant 0 : index
    %c0_72 = arith.constant 0 : index
    %98 = vector.load %arg10[%c0_71, %c0_72] : memref<128x128xf32, #tpu.memory_space<vmem>>, vector<128x128xf32>
    %cst_73 = arith.constant dense<0.000000e+00> : vector<8x128xf32>
    %99 = tpu.matmul %97, %98, %cst_73 {dimension_numbers = #tpu.dot_dimension_numbers<[1], [0], [0], [1], [0, 0, 1, 1], [], []>} : vector<8x128xf32>, vector<128x128xf32>, vector<8x128xf32> -> vector<8x128xf32>
    %c0_74 = arith.constant 0 : index
    %c0_75 = arith.constant 0 : index
    %100 = vector.load %arg11[%c0_74, %c0_75] : memref<1x128xf32, #tpu.memory_space<vmem>>, vector<1x128xf32>
    %101 = vector.broadcast %100 : vector<1x128xf32> to vector<8x128xf32>
    %102 = arith.addf %99, %101 : vector<8x128xf32>
    %c0_76 = arith.constant 0 : index
    %c0_77 = arith.constant 0 : index
    %103 = vector.load %arg12[%c0_76, %c0_77] : memref<8x128xf32, #tpu.memory_space<vmem>>, vector<8x128xf32>
    tpu.vector_store %arg12[%c0_76, %c0_77], %102 {strides = array<i32>} : memref<8x128xf32, #tpu.memory_space<vmem>>, vector<8x128xf32>,
    return
  }
}

</mosaic_0001>

<bundles_post_ra>
// kernel: graph_net_forward.1
= control target key start
LH: loop header
LB: loop body
LE: loop exit
PB: predicated region body
PF: predicated region fallthrough
CT: control target
= control target key end

     0   :  { %vm2848_vm0 = vmmov 0   ;;  %s3530_s2 = inlined_call_operand.vmem [shape: bf16[128,128], index: 2, kind: input, shape index: {}]   ;;  %s3531_s1 = inlined_call_operand.vmem [shape: bf16[128,128], index: 1, kind: input, shape index: {}]   ;;  %s3532_s0 = inlined_call_operand.vmem [shape: s8[128,128], index: 0, kind: input, shape index: {}]   ;;  %s3533_s5 = inlined_call_operand.vmem [shape: bf16[3,128,128], index: 5, kind: input, shape index: {}]   ;;  %s3534_s3 = inlined_call_operand.vmem [shape: f32[1,128], index: 3, kind: input, shape index: {}]   ;;  %s3535_s7 = inlined_call_operand.vmem [shape: bf16[3,128,128], index: 7, kind: input, shape index: {}]   ;;  %s3536_s4 = inlined_call_operand.vmem [shape: f32[3,1,128], index: 4, kind: input, shape index: {}]   ;;  %s3537_s6 = inlined_call_operand.vmem [shape: f32[3,1,128], index: 6, kind: input, shape index: {}]   ;;  %s3538_s8 = inlined_call_operand.vmem [shape: f32[3,1,128], index: 8, kind: input, shape index: {}]   ;;  %s3539_s10 = inlined_call_operand.vmem [shape: f32[128,128], index: 10, kind: input, shape index: {}]   ;;  %s3540_s9 = inlined_call_operand.vmem [shape: bf16[8,128], index: 9, kind: input, shape index: {}]   ;;  %s3541_s11 = inlined_call_operand.vmem [shape: f32[1,128], index: 11, kind: input, shape index: {}]   ;;  %s3542_s12 = inlined_call_operand.vmem [shape: f32[8,128], index: 12, kind: output, shape index: {}]  }
   0x1   :  { %v2783_v0 = vld [vmem:[%s3530_s2 + $0x38] sm:$0xff]   ;;  %v2784_v1 = vld [vmem:[%s3530_s2 + $0x30] sm:$0xff]   ;;  %v2785_v2 = vld [vmem:[%s3530_s2 + $0x28] sm:$0xff]  }
   0x2   :  { %2406 = vmatprep.subr.bf16.mxu0 %v2783_v0  ;;  %v2786_v3 = vld [vmem:[%s3530_s2 + $0x20] sm:$0xff]   ;;  %v2787_v5 = vld [vmem:[%s3530_s2 + $0x18] sm:$0xff]   ;;  %v2788_v6 = vld [vmem:[%s3530_s2 + $0x10] sm:$0xff]  }
   0x3   :  { %2407 = vmatpush3.bf16.msra.mxu0 %v2783_v0  ;;  %v2791_v4 = vld [vmem:[%s3531_s1] sm:$0xff]   ;;  %v2789_v7 = vld [vmem:[%s3530_s2 + $0x8] sm:$0xff]   ;;  %v2793_v10 = vld [vmem:[%s3531_s1 + $0x10] sm:$0xff]  }
   0x4   :  { %2408 = vmatprep.subr.bf16.mxu0 %v2784_v1  ;;  %2422 = vmatprep.mubr.bf16.mxu0 %v2791_v4  ;;  %v2790_v8 = vld [vmem:[%s3530_s2] sm:$0xff]   ;;  %v2792_v9 = vld [vmem:[%s3531_s1 + $0x8] sm:$0xff]   ;;  %v2794_v11 = vld [vmem:[%s3531_s1 + $0x18] sm:$0xff]  }
   0x5   :  { %v2795_v12 = vld [vmem:[%s3531_s1 + $0x20] sm:$0xff]   ;;  %v2796_v13 = vld [vmem:[%s3531_s1 + $0x28] sm:$0xff]   ;;  %v2797_v14 = vld [vmem:[%s3531_s1 + $0x30] sm:$0xff]  }
   0x6   :  { %v2798_v15 = vld [vmem:[%s3531_s1 + $0x38] sm:$0xff]   ;;  %v2965_v16 = vld [vmem:[%s3532_s0] sm:$0xff]  ;;  %v2800_v19 = vld [vmem:[%s3533_s5 + $0x30] sm:$0xff]  }
   0x7   :  { %2409 = vmatpush3.bf16.msra.mxu0 %v2784_v1  ;;  %v2968_v17 = vunpack.c.l.s8.bf16 %v2965_v16  ;;  %v2799_v18 = vld [vmem:[%s3533_s5 + $0x38] sm:$0xff]   ;;  %v2801_v20 = vld [vmem:[%s3533_s5 + $0x28] sm:$0xff]   ;;  %v2802_v21 = vld [vmem:[%s3533_s5 + $0x20] sm:$0xff]  }
   0x8   :  { %2410 = vmatprep.subr.bf16.mxu0 %v2785_v2  ;;  %v2803_v22 = vld [vmem:[%s3533_s5 + $0x18] sm:$0xff]   ;;  %v2075_v36 = vld [vmem:[%s3534_s3] ss:$0 sm:$0xff] }
   0x9   :  { %2454 = vmatprep.mubr.bf16.mxu1 %v2968_v17 }
   0xb   :  { %2411 = vmatpush3.bf16.msra.mxu0 %v2785_v2 }
   0xc   :  { %2412 = vmatprep.subr.bf16.mxu0 %v2786_v3 }
   0xf   :  { %2413 = vmatpush3.bf16.msra.mxu0 %v2786_v3 }
  0x10   :  { %2414 = vmatprep.subr.bf16.mxu0 %v2787_v5 }
  0x13   :  { %2415 = vmatpush3.bf16.msra.mxu0 %v2787_v5 }
  0x14   :  { %2416 = vmatprep.subr.bf16.mxu0 %v2788_v6 }
  0x17   :  { %2417 = vmatpush3.bf16.msra.mxu0 %v2788_v6 }
  0x18   :  { %2418 = vmatprep.subr.bf16.mxu0 %v2789_v7 }
  0x1b   :  { %2419 = vmatpush3.bf16.msra.mxu0 %v2789_v7 }
  0x1c   :  { %2420 = vmatprep.subr.bf16.mxu0 %v2790_v8 }
  0x1f   :  { %2421 = vmatpush3.bf16.msra.mxu0 %v2790_v8 }
  0x20   :  { %2470 = vmatprep.subr.bf16.mxu0 %v2799_v18 }
  0x22   :  { %2423 = vmatmul.mubr.bf16.vlgmr.msra.gmra.mxu0 %v2792_v9 }
  0x23   :  { %2426 = vmatprep.mubr.bf16.mxu0 %v2793_v10  ;;  %2471 = vmatpush3.bf16.msra.mxu0 %v2799_v18  ;;  %v43_v18 = vld [vmem:[%s3532_s0 + $0x8] sm:$0xff] }
  0x24   :  { %2472 = vmatprep.subr.bf16.mxu0 %v2800_v19 }
  0x27   :  { %2473 = vmatpush3.bf16.msra.mxu0 %v2800_v19  ;;  %v3038_v19 = vunpack.c.h.s8.bf16 %v2965_v16  ;;  %v45_v16 = vld [vmem:[%s3532_s0 + $0x18] sm:$0xff] }
  0x28   :  { %2474 = vmatprep.subr.bf16.mxu0 %v2801_v20 }
  0x2a   :  { %2427 = vmatmul.mubr.bf16.gmra.mxu0 %v2794_v11 }
  0x2b   :  { %2430 = vmatprep.mubr.bf16.mxu0 %v2795_v12  ;;  %2475 = vmatpush3.bf16.msra.mxu0 %v2801_v20  ;;  %v3040_v20 = vunpack.c.l.s8.bf16 %v43_v18 }
  0x2c   :  { %2476 = vmatprep.subr.bf16.mxu0 %v2802_v21 }
  0x2f   :  { %2477 = vmatpush3.bf16.msra.mxu0 %v2802_v21  ;;  %v44_v21 = vld [vmem:[%s3532_s0 + $0x10] sm:$0xff] }
  0x30   :  { %2478 = vmatprep.subr.bf16.mxu0 %v2803_v22 }
  0x32   :  { %2431 = vmatmul.mubr.bf16.gmra.mxu0 %v2796_v13 }
  0x33   :  { %2434 = vmatprep.mubr.bf16.mxu0 %v2797_v14  ;;  %2479 = vmatpush3.bf16.msra.mxu0 %v2803_v22  ;;  %v3047_v22 = vunpack.c.h.s8.bf16 %v43_v18 }
  0x3a   :  { %2435 = vmatmul.mubr.bf16.gmra.mxu0 %v2798_v15 }
  0xe2   :  { %v2424_v23 = vpop.f32.mrf.mxu0 }
  0xe3   :  { %v3026_v5 = vadd.f32 %v2424_v23, %v2075_v36  ;;  %v3049_v23 = vunpack.c.l.s8.bf16 %v44_v21 }
  0xe4   :  { %v223_v24 = vpop.f32.mrf.mxu0 }
  0xe5   :  { %v288_v10 = vmax.f32 %v3026_v5, 0.0  ;;  %v224_v11 = vadd.f32 %v2075_v36, %v223_v24  ;;  %v3056_v24 = vunpack.c.h.s8.bf16 %v44_v21 }
  0xe6   :  { %v2425_v25 = vpop.f32.mrf.mxu0 }
  0xe7   :  { %v3023_v2 = vadd.f32 %v2425_v25, %v2075_v36  ;;  %v286_v14 = vmax.f32 %v224_v11, 0.0  ;;  %v3058_v25 = vunpack.c.l.s8.bf16 %v45_v16 }
  0xe8   :  { %v226_v26 = vpop.f32.mrf.mxu0 }
  0xe9   :  { %v289_v7 = vmax.f32 %v3023_v2, 0.0  ;;  %v3030_v8 = vadd.f32 %v2075_v36, %v226_v26  ;;  %v3062_v26 = vunpack.c.h.s8.bf16 %v45_v16 }
  0xea   :  { %v2428_v27 = vpop.f32.mrf.mxu0 }
  0xeb   :  { %v3014_v59 = vadd.f32 %v2428_v27, %v2075_v36  ;;  %v287_v12 = vmax.f32 %v3030_v8, 0.0  ;;  %v303_v13 = vpack.c.bf16 %v289_v7, %v288_v10  ;;  %v2804_v27 = vld [vmem:[%s3533_s5 + $0x10] sm:$0xff]  }
  0xec   :  { %v239_v28 = vpop.f32.mrf.mxu0  ;;  %2480 = vmatprep.subr.bf16.mxu0 %v2804_v27 }
  0xed   :  { %v292_v0 = vmax.f32 %v3014_v59, 0.0  ;;  %v3021_v1 = vadd.f32 %v2075_v36, %v239_v28  ;;  %v302_v15 = vpack.c.bf16 %v287_v12, %v286_v14  ;;  %2481 = vmatpush3.bf16.msra.mxu0 %v2804_v27  ;;  %v2805_v28 = vld [vmem:[%s3533_s5 + $0x8] sm:$0xff]  }
  0xee   :  { %v2429_v29 = vpop.f32.mrf.mxu0  ;;  %2482 = vmatprep.subr.bf16.mxu0 %v2805_v28 }
  0xef   :  { %v3011_v56 = vadd.f32 %v2429_v29, %v2075_v36  ;;  %v290_v6 = vmax.f32 %v3021_v1, 0.0  ;;  %v2806_v29 = vld [vmem:[%s3533_s5] sm:$0xff]  }
  0xf0   :  { %v242_v30 = vpop.f32.mrf.mxu0 }
  0xf1   :  { %v293_v61 = vmax.f32 %v3011_v56, 0.0  ;;  %v3018_v62 = vadd.f32 %v2075_v36, %v242_v30  ;;  %2483 = vmatpush3.bf16.msra.mxu0 %v2805_v28  ;;  %v2807_v30 = vld [vmem:[%s3535_s7 + $0x38] sm:$0xff]  }
  0xf2   :  { %v2432_v31 = vpop.f32.mrf.mxu0  ;;  %2484 = vmatprep.subr.bf16.mxu0 %v2806_v29 }
  0xf3   :  { %v3001_v47 = vadd.f32 %v2432_v31, %v2075_v36  ;;  %v291_v3 = vmax.f32 %v3018_v62, 0.0  ;;  %v305_v4 = vpack.c.bf16 %v293_v61, %v292_v0  ;;  %v2808_v31 = vld [vmem:[%s3535_s7 + $0x30] sm:$0xff]  }
  0xf4   :  { %v255_v32 = vpop.f32.mrf.mxu0 }
  0xf5   :  { %v296_v54 = vmax.f32 %v3001_v47, 0.0  ;;  %v3009_v55 = vadd.f32 %v2075_v36, %v255_v32  ;;  %v304_v9 = vpack.c.bf16 %v291_v3, %v290_v6  ;;  %2485 = vmatpush3.bf16.msra.mxu0 %v2806_v29  ;;  %v2809_v32 = vld [vmem:[%s3535_s7 + $0x28] sm:$0xff]  }
  0xf6   :  { %v2433_v33 = vpop.f32.mrf.mxu0 }
  0xf7   :  { %v2995_v43 = vadd.f32 %v2433_v33, %v2075_v36  ;;  %v294_v60 = vmax.f32 %v3009_v55, 0.0  ;;  %v2810_v33 = vld [vmem:[%s3535_s7 + $0x20] sm:$0xff]  }
  0xf8   :  { %v258_v34 = vpop.f32.mrf.mxu0 }
  0xf9   :  { %v297_v51 = vmax.f32 %v2995_v43, 0.0  ;;  %v3006_v52 = vadd.f32 %v2075_v36, %v258_v34  ;;  %v2811_v34 = vld [vmem:[%s3535_s7 + $0x18] sm:$0xff]  }
  0xfa   :  { %v2436_v35 = vpop.f32.mrf.mxu0 }
  0xfb   :  { %v2989_v38 = vadd.f32 %v2436_v35, %v2075_v36  ;;  %v295_v57 = vmax.f32 %v3006_v52, 0.0  ;;  %v307_v58 = vpack.c.bf16 %v297_v51, %v296_v54 }
  0xfc   :  { %v271_v37 = vpop.f32.mrf.mxu0 }
  0xfd   :  { %v2991_v40 = vadd.f32 %v2075_v36, %v271_v37  ;;  %v300_v44 = vmax.f32 %v2989_v38, 0.0  ;;  %v306_v63 = vpack.c.bf16 %v295_v57, %v294_v60 }
  0xfe   :  { %v2437_v39 = vpop.f32.mrf.mxu0 }
  0xff   :  { %v2993_v41 = vadd.f32 %v2437_v39, %v2075_v36  ;;  %v298_v48 = vmax.f32 %v2991_v40, 0.0 }
 0x100   :  { %v274_v42 = vpop.f32.mrf.mxu0 }
 0x101   :  { %v301_v45 = vmax.f32 %v2993_v41, 0.0  ;;  %v2999_v46 = vadd.f32 %v2075_v36, %v274_v42  ;;  %v2092_v36 = vld [vmem:[%s3536_s4] ss:$0 sm:$0xff] }
 0x102   :  { %v416_v39 = vmul.f32 %v2092_v36, %v3026_v5  ;;  %v417_v42 = vmul.f32 %v2092_v36, %v3023_v2  ;;  %v421_v0 = vmul.f32 %v2092_v36, %v3011_v56  ;;  %v419_v6 = vmul.f32 %v2092_v36, %v3018_v62 }
 0x103   :  { %v299_v49 = vmax.f32 %v2999_v46, 0.0  ;;  %v309_v50 = vpack.c.bf16 %v301_v45, %v300_v44  ;;  %v425_v56 = vmul.f32 %v2092_v36, %v2995_v43  ;;  %v423_v62 = vmul.f32 %v2092_v36, %v3006_v52 }
 0x104   :  { %v429_v43 = vmul.f32 %v2092_v36, %v2993_v41  ;;  %v427_v52 = vmul.f32 %v2092_v36, %v2999_v46  ;;  %v2814_v41 = vld [vmem:[%s3535_s7] sm:$0xff]  }
 0x105   :  { %2438 = vmatprep.subr.bf16.mxu1 %v309_v50  ;;  %v308_v53 = vpack.c.bf16 %v299_v49, %v298_v48  ;;  %v414_v48 = vmul.f32 %v2092_v36, %v224_v11 }
 0x106   :  { %2439 = vmatpush3.bf16.msra.mxu1 %v309_v50  ;;  %v415_v50 = vmul.f32 %v2092_v36, %v3030_v8 }
 0x107   :  { %2440 = vmatprep.subr.bf16.mxu1 %v308_v53 }
 0x10a   :  { %2441 = vmatpush3.bf16.msra.mxu1 %v308_v53 }
 0x10b   :  { %2442 = vmatprep.subr.bf16.mxu1 %v307_v58 }
 0x10e   :  { %2443 = vmatpush3.bf16.msra.mxu1 %v307_v58 }
 0x10f   :  { %2444 = vmatprep.subr.bf16.mxu1 %v306_v63 }
 0x112   :  { %2445 = vmatpush3.bf16.msra.mxu1 %v306_v63  ;;  %v420_v63 = vmul.f32 %v2092_v36, %v3014_v59  ;;  %v424_v59 = vmul.f32 %v2092_v36, %v3001_v47  ;;  %v428_v47 = vmul.f32 %v2092_v36, %v2989_v38  ;;  %v2812_v38 = vld [vmem:[%s3535_s7 + $0x10] sm:$0xff]  }
 0x113   :  { %2446 = vmatprep.subr.bf16.mxu1 %v305_v4 }
 0x116   :  { %2447 = vmatpush3.bf16.msra.mxu1 %v305_v4  ;;  %v418_v4 = vmul.f32 %v2092_v36, %v3021_v1  ;;  %v422_v1 = vmul.f32 %v2092_v36, %v3009_v55  ;;  %v426_v55 = vmul.f32 %v2092_v36, %v2991_v40  ;;  %v2813_v40 = vld [vmem:[%s3535_s7 + $0x8] sm:$0xff]  }
 0x117   :  { %2448 = vmatprep.subr.bf16.mxu1 %v304_v9 }
 0x11a   :  { %2449 = vmatpush3.bf16.msra.mxu1 %v304_v9 }
 0x11b   :  { %2450 = vmatprep.subr.bf16.mxu1 %v303_v13 }
 0x11e   :  { %2451 = vmatpush3.bf16.msra.mxu1 %v303_v13 }
 0x11f   :  { %2452 = vmatprep.subr.bf16.mxu1 %v302_v15 }
 0x122   :  { %2453 = vmatpush3.bf16.msra.mxu1 %v302_v15 }
 0x123   :  { %2502 = vmatprep.subr.bf16.mxu1 %v2807_v30 }
 0x125   :  { %2455 = vmatmul.mubr.bf16.vlgmr.msra.gmra.mxu1 %v3038_v19 }
 0x126   :  { %2458 = vmatprep.mubr.bf16.mxu1 %v3040_v20  ;;  %2503 = vmatpush3.bf16.msra.mxu1 %v2807_v30 }
 0x127   :  { %2504 = vmatprep.subr.bf16.mxu1 %v2808_v31 }
 0x12a   :  { %2505 = vmatpush3.bf16.msra.mxu1 %v2808_v31 }
 0x12b   :  { %2506 = vmatprep.subr.bf16.mxu1 %v2809_v32 }
 0x12d   :  { %2459 = vmatmul.mubr.bf16.gmra.mxu1 %v3047_v22 }
 0x12e   :  { %2462 = vmatprep.mubr.bf16.mxu1 %v3049_v23  ;;  %2507 = vmatpush3.bf16.msra.mxu1 %v2809_v32 }
 0x12f   :  { %2508 = vmatprep.subr.bf16.mxu1 %v2810_v33 }
 0x132   :  { %2509 = vmatpush3.bf16.msra.mxu1 %v2810_v33 }
 0x133   :  { %2510 = vmatprep.subr.bf16.mxu1 %v2811_v34 }
 0x135   :  { %2463 = vmatmul.mubr.bf16.gmra.mxu1 %v3056_v24 }
 0x136   :  { %2466 = vmatprep.mubr.bf16.mxu1 %v3058_v25  ;;  %2511 = vmatpush3.bf16.msra.mxu1 %v2811_v34 }
 0x137   :  { %2512 = vmatprep.subr.bf16.mxu1 %v2812_v38 }
 0x13a   :  { %2513 = vmatpush3.bf16.msra.mxu1 %v2812_v38 }
 0x13b   :  { %2514 = vmatprep.subr.bf16.mxu1 %v2813_v40 }
 0x13d   :  { %2467 = vmatmul.mubr.bf16.gmra.mxu1 %v3062_v26 }
 0x13e   :  { %2515 = vmatpush3.bf16.msra.mxu1 %v2813_v40 }
 0x13f   :  { %2516 = vmatprep.subr.bf16.mxu1 %v2814_v41 }
 0x142   :  { %2517 = vmatpush3.bf16.msra.mxu1 %v2814_v41 }
 0x1e5   :  { %v2456_v35 = vpop.f32.mrf.mxu1 }
 0x1e6   :  { %v432_v45 = vadd.f32 %v2456_v35, %v416_v39 }
 0x1e7   :  { %v344_v37 = vpop.f32.mrf.mxu1 }
 0x1e8   :  { %v430_v53 = vadd.f32 %v414_v48, %v344_v37 }
 0x1e9   :  { %v2457_v44 = vpop.f32.mrf.mxu1 }
 0x1ea   :  { %v433_v49 = vadd.f32 %v2457_v44, %v417_v42 }
 0x1eb   :  { %v347_v51 = vpop.f32.mrf.mxu1 }
 0x1ec   :  { %v447_v54 = vpack.c.bf16 %v433_v49, %v432_v45  ;;  %v431_v57 = vadd.f32 %v415_v50, %v347_v51  ;;  %v2093_v45 = vld [vmem:[%s3537_s6] ss:$0 sm:$0xff] }
 0x1ed   :  { %v2460_v58 = vpop.f32.mrf.mxu1 }
 0x1ee   :  { %v446_v60 = vpack.c.bf16 %v431_v57, %v430_v53  ;;  %v436_v2 = vadd.f32 %v2460_v58, %v420_v63 }
 0x1ef   :  { %v360_v61 = vpop.f32.mrf.mxu1 }
 0x1f0   :  { %2486 = vmatprep.mubr.bf16.mxu0 %v446_v60  ;;  %v434_v8 = vadd.f32 %v418_v4, %v360_v61 }
 0x1f1   :  { %v2461_v3 = vpop.f32.mrf.mxu1  ;;  %2487 = vmatmul.mubr.bf16.vlgmr.msra.gmra.mxu0 %v447_v54 }
 0x1f2   :  { %v437_v5 = vadd.f32 %v2461_v3, %v421_v0 }
 0x1f3   :  { %v363_v7 = vpop.f32.mrf.mxu1 }
 0x1f4   :  { %v449_v9 = vpack.c.bf16 %v437_v5, %v436_v2  ;;  %v435_v10 = vadd.f32 %v419_v6, %v363_v7 }
 0x1f5   :  { %v2464_v11 = vpop.f32.mrf.mxu1 }
 0x1f6   :  { %v448_v12 = vpack.c.bf16 %v435_v10, %v434_v8  ;;  %v440_v15 = vadd.f32 %v2464_v11, %v424_v59 }
 0x1f7   :  { %v376_v13 = vpop.f32.mrf.mxu1 }
 0x1f8   :  { %2490 = vmatprep.mubr.bf16.mxu0 %v448_v12  ;;  %v438_v16 = vadd.f32 %v422_v1, %v376_v13 }
 0x1f9   :  { %v2465_v14 = vpop.f32.mrf.mxu1  ;;  %2491 = vmatmul.mubr.bf16.gmra.mxu0 %v449_v9 }
 0x1fa   :  { %v441_v18 = vadd.f32 %v2465_v14, %v425_v56 }
 0x1fb   :  { %v379_v21 = vpop.f32.mrf.mxu1 }
 0x1fc   :  { %v451_v27 = vpack.c.bf16 %v441_v18, %v440_v15  ;;  %v439_v28 = vadd.f32 %v423_v62, %v379_v21 }
 0x1fd   :  { %v2468_v29 = vpop.f32.mrf.mxu1 }
 0x1fe   :  { %v450_v30 = vpack.c.bf16 %v439_v28, %v438_v16  ;;  %v444_v33 = vadd.f32 %v2468_v29, %v428_v47 }
 0x1ff   :  { %v392_v31 = vpop.f32.mrf.mxu1 }
 0x200   :  { %2494 = vmatprep.mubr.bf16.mxu0 %v450_v30  ;;  %v442_v37 = vadd.f32 %v426_v55, %v392_v31 }
 0x201   :  { %v2469_v32 = vpop.f32.mrf.mxu1  ;;  %2495 = vmatmul.mubr.bf16.gmra.mxu0 %v451_v27 }
 0x202   :  { %v445_v34 = vadd.f32 %v2469_v32, %v429_v43 }
 0x203   :  { %v395_v35 = vpop.f32.mrf.mxu1 }
 0x204   :  { %v453_v39 = vpack.c.bf16 %v445_v34, %v444_v33  ;;  %v443_v42 = vadd.f32 %v427_v52, %v395_v35 }
 0x206   :  { %v452_v44 = vpack.c.bf16 %v443_v42, %v442_v37 }
 0x208   :  { %2498 = vmatprep.mubr.bf16.mxu0 %v452_v44 }
 0x209   :  { %2499 = vmatmul.mubr.bf16.gmra.mxu0 %v453_v39 }
 0x20a   :  { %2550 = vmatprep.mubr.bf16.mxu0 %v2968_v17 }
 0x2b1   :  { %v2488_v46 = vpop.f32.mrf.mxu0 }
 0x2b2   :  { %v568_v51 = vadd.f32 %v2488_v46, %v2093_v45 }
 0x2b3   :  { %v559_v36 = vpop.f32.mrf.mxu0 }
 0x2b4   :  { %v560_v49 = vadd.f32 %v2093_v45, %v559_v36  ;;  %v624_v63 = vmax.f32 %v568_v51, 0.0  ;;  %v2815_v36 = vld [vmem:[%s3533_s5 + $0x78] sm:$0xff]  }
 0x2b5   :  { %v2489_v48 = vpop.f32.mrf.mxu0  ;;  %2566 = vmatprep.subr.bf16.mxu1 %v2815_v36 }
 0x2b6   :  { %v571_v50 = vadd.f32 %v2489_v48, %v2093_v45  ;;  %v622_v60 = vmax.f32 %v560_v49, 0.0  ;;  %v2816_v48 = vld [vmem:[%s3533_s5 + $0x70] sm:$0xff]   ;;  %v2818_v49 = vld [vmem:[%s3533_s5 + $0x60] sm:$0xff]  }
 0x2b7   :  { %v562_v53 = vpop.f32.mrf.mxu0 }
 0x2b8   :  { %v563_v54 = vadd.f32 %v2093_v45, %v562_v53  ;;  %v625_v57 = vmax.f32 %v571_v50, 0.0  ;;  %v2819_v50 = vld [vmem:[%s3533_s5 + $0x58] sm:$0xff]  }
 0x2b9   :  { %v2492_v58 = vpop.f32.mrf.mxu0 }
 0x2ba   :  { %v623_v61 = vmax.f32 %v563_v54, 0.0  ;;  %v639_v2 = vpack.c.bf16 %v625_v57, %v624_v63  ;;  %v584_v7 = vadd.f32 %v2492_v58, %v2093_v45 }
 0x2bb   :  { %v575_v0 = vpop.f32.mrf.mxu0 }
 0x2bc   :  { %v638_v3 = vpack.c.bf16 %v623_v61, %v622_v60  ;;  %v576_v5 = vadd.f32 %v2093_v45, %v575_v0  ;;  %v628_v59 = vmax.f32 %v584_v7, 0.0 }
 0x2bd   :  { %v2493_v4 = vpop.f32.mrf.mxu0 }
 0x2be   :  { %v587_v6 = vadd.f32 %v2493_v4, %v2093_v45  ;;  %2518 = vmatprep.mubr.bf16.mxu1 %v638_v3  ;;  %v626_v12 = vmax.f32 %v576_v5, 0.0  ;;  %v2102_v5 = vld [vmem:[%s3538_s8] ss:$0 sm:$0xff] }
 0x2bf   :  { %v578_v8 = vpop.f32.mrf.mxu0  ;;  %2519 = vmatmul.mubr.bf16.vlgmr.msra.gmra.mxu1 %v639_v2 }
 0x2c0   :  { %v579_v9 = vadd.f32 %v2093_v45, %v578_v8  ;;  %v629_v10 = vmax.f32 %v587_v6, 0.0  ;;  %2567 = vmatpush3.bf16.msra.mxu1 %v2815_v36 }
 0x2c1   :  { %v2496_v11 = vpop.f32.mrf.mxu0  ;;  %2568 = vmatprep.subr.bf16.mxu1 %v2816_v48 }
 0x2c2   :  { %v627_v13 = vmax.f32 %v579_v9, 0.0  ;;  %v641_v15 = vpack.c.bf16 %v629_v10, %v628_v59  ;;  %v600_v21 = vadd.f32 %v2496_v11, %v2093_v45 }
 0x2c3   :  { %v591_v56 = vpop.f32.mrf.mxu0 }
 0x2c4   :  { %v640_v14 = vpack.c.bf16 %v627_v13, %v626_v12  ;;  %v592_v18 = vadd.f32 %v2093_v45, %v591_v56  ;;  %v632_v47 = vmax.f32 %v600_v21, 0.0  ;;  %2569 = vmatpush3.bf16.msra.mxu1 %v2816_v48 }
 0x2c5   :  { %v2497_v1 = vpop.f32.mrf.mxu0 }
 0x2c6   :  { %v603_v62 = vadd.f32 %v2497_v1, %v2093_v45  ;;  %2522 = vmatprep.mubr.bf16.mxu1 %v640_v14  ;;  %v630_v30 = vmax.f32 %v592_v18, 0.0 }
 0x2c7   :  { %v594_v16 = vpop.f32.mrf.mxu0  ;;  %2523 = vmatmul.mubr.bf16.gmra.mxu1 %v641_v15 }
 0x2c8   :  { %v595_v27 = vadd.f32 %v2093_v45, %v594_v16  ;;  %v633_v28 = vmax.f32 %v603_v62, 0.0 }
 0x2c9   :  { %v2500_v29 = vpop.f32.mrf.mxu0 }
 0x2ca   :  { %v631_v31 = vmax.f32 %v595_v27, 0.0  ;;  %v643_v33 = vpack.c.bf16 %v633_v28, %v632_v47  ;;  %v616_v35 = vadd.f32 %v2500_v29, %v2093_v45 }
 0x2cb   :  { %v607_v43 = vpop.f32.mrf.mxu0 }
 0x2cc   :  { %v642_v32 = vpack.c.bf16 %v631_v31, %v630_v30  ;;  %v608_v34 = vadd.f32 %v2093_v45, %v607_v43  ;;  %v636_v40 = vmax.f32 %v616_v35, 0.0 }
 0x2cd   :  { %v2501_v55 = vpop.f32.mrf.mxu0 }
 0x2ce   :  { %v619_v52 = vadd.f32 %v2501_v55, %v2093_v45  ;;  %2526 = vmatprep.mubr.bf16.mxu1 %v642_v32  ;;  %v634_v44 = vmax.f32 %v608_v34, 0.0 }
 0x2cf   :  { %v610_v37 = vpop.f32.mrf.mxu0  ;;  %2527 = vmatmul.mubr.bf16.gmra.mxu1 %v643_v33 }
 0x2d0   :  { %v611_v39 = vadd.f32 %v2093_v45, %v610_v37  ;;  %v637_v42 = vmax.f32 %v619_v52, 0.0  ;;  %v2817_v45 = vld [vmem:[%s3533_s5 + $0x68] sm:$0xff]  }
 0x2d1   :  { %2570 = vmatprep.subr.bf16.mxu1 %v2817_v45 }
 0x2d2   :  { %v635_v38 = vmax.f32 %v611_v39, 0.0  ;;  %v645_v46 = vpack.c.bf16 %v637_v42, %v636_v40  ;;  %2571 = vmatpush3.bf16.msra.mxu1 %v2817_v45 }
 0x2d3   :  { %2572 = vmatprep.subr.bf16.mxu1 %v2818_v49 }
 0x2d4   :  { %v644_v41 = vpack.c.bf16 %v635_v38, %v634_v44 }
 0x2d6   :  { %2530 = vmatprep.mubr.bf16.mxu1 %v644_v41  ;;  %2573 = vmatpush3.bf16.msra.mxu1 %v2818_v49 }
 0x2d7   :  { %2531 = vmatmul.mubr.bf16.gmra.mxu1 %v645_v46  ;;  %2574 = vmatprep.subr.bf16.mxu1 %v2819_v50 }
 0x2da   :  { %2575 = vmatpush3.bf16.msra.mxu1 %v2819_v50 }
 0x37f   :  { %v2520_v51 = vpop.f32.mrf.mxu1 }
 0x380   :  { %v3197_v49 = vadd.f32 %v2520_v51, %v2102_v5 }
 0x381   :  { %v3135_v53 = vpop.f32.mrf.mxu1 }
 0x382   :  { %v752_v51 = vadd.f32 %v2102_v5, %v3135_v53  ;;  %v2820_v53 = vld [vmem:[%s3533_s5 + $0x50] sm:$0xff]  }
 0x383   :  { %v2521_v54 = vpop.f32.mrf.mxu1  ;;  %2576 = vmatprep.subr.bf16.mxu1 %v2820_v53 }
 0x384   :  { %v3192_v46 = vadd.f32 %v2521_v54, %v2102_v5  ;;  %2577 = vmatpush3.bf16.msra.mxu1 %v2820_v53 }
 0x385   :  { %v3137_v57 = vpop.f32.mrf.mxu1 }
 0x386   :  { %v3204_v54 = vadd.f32 %v2102_v5, %v3137_v57 }
 0x387   :  { %v2524_v58 = vpop.f32.mrf.mxu1 }
 0x388   :  { %v3177_v34 = vadd.f32 %v2524_v58, %v2102_v5 }
 0x389   :  { %v767_v60 = vpop.f32.mrf.mxu1 }
 0x38a   :  { %v820_v38 = vmax.f32 %v3177_v34, 0.0  ;;  %v3188_v40 = vadd.f32 %v2102_v5, %v767_v60  ;;  %v817_v60 = vmax.f32 %v3192_v46, 0.0 }
 0x38b   :  { %v2525_v61 = vpop.f32.mrf.mxu1 }
 0x38c   :  { %v3172_v43 = vadd.f32 %v2525_v61, %v2102_v5  ;;  %v836_v50 = vmax.f32 %v820_v38, 0.0  ;;  %v818_v58 = vmax.f32 %v3188_v40, 0.0 }
 0x38d   :  { %v770_v63 = vpop.f32.mrf.mxu1 }
 0x38e   :  { %v821_v37 = vmax.f32 %v3172_v43, 0.0  ;;  %v3183_v39 = vadd.f32 %v2102_v5, %v770_v63 }
 0x38f   :  { %v2528_v0 = vpop.f32.mrf.mxu1 }
 0x390   :  { %v3151_v59 = vadd.f32 %v2528_v0, %v2102_v5  ;;  %v837_v36 = vmax.f32 %v821_v37, 0.0  ;;  %v819_v48 = vmax.f32 %v3183_v39, 0.0  ;;  %v816_v0 = vmax.f32 %v3197_v49, 0.0 }
 0x391   :  { %v783_v3 = vpop.f32.mrf.mxu1 }
 0x392   :  { %v824_v28 = vmax.f32 %v3151_v59, 0.0  ;;  %v3166_v29 = vadd.f32 %v2102_v5, %v783_v3  ;;  %v835_v61 = vmax.f32 %v819_v48, 0.0  ;;  %v849_v63 = vpack.c.bf16 %v837_v36, %v836_v50 }
 0x393   :  { %v2529_v2 = vpop.f32.mrf.mxu1  ;;  %v834_v3 = vmax.f32 %v818_v58, 0.0  ;;  %v832_v57 = vmax.f32 %v816_v0, 0.0 }
 0x394   :  { %v3146_v10 = vadd.f32 %v2529_v2, %v2102_v5  ;;  %v840_v52 = vmax.f32 %v824_v28, 0.0  ;;  %v822_v35 = vmax.f32 %v3166_v29, 0.0  ;;  %v833_v2 = vmax.f32 %v817_v60, 0.0 }
 0x395   :  { %v786_v4 = vpop.f32.mrf.mxu1 }
 0x396   :  { %v825_v18 = vmax.f32 %v3146_v10, 0.0  ;;  %v3158_v62 = vadd.f32 %v2102_v5, %v786_v4  ;;  %v838_v41 = vmax.f32 %v822_v35, 0.0  ;;  %v815_v4 = vmax.f32 %v3204_v54, 0.0 }
 0x397   :  { %v2532_v6 = vpop.f32.mrf.mxu1 }
 0x398   :  { %v3142_v7 = vadd.f32 %v2532_v6, %v2102_v5  ;;  %v841_v32 = vmax.f32 %v825_v18, 0.0  ;;  %v823_v33 = vmax.f32 %v3158_v62, 0.0  ;;  %v848_v6 = vpack.c.bf16 %v835_v61, %v834_v3 }
 0x399   :  { %v799_v8 = vpop.f32.mrf.mxu1 }
 0x39a   :  { %v3144_v9 = vadd.f32 %v2102_v5, %v799_v8  ;;  %v828_v12 = vmax.f32 %v3142_v7, 0.0  ;;  %v839_v42 = vmax.f32 %v823_v33, 0.0  ;;  %v851_v44 = vpack.c.bf16 %v841_v32, %v840_v52  ;;  %v2825_v32 = vld [vmem:[%s3535_s7 + $0x68] sm:$0xff]   ;;  %v2827_v52 = vld [vmem:[%s3535_s7 + $0x58] sm:$0xff]  }
 0x39b   :  { %v2533_v11 = vpop.f32.mrf.mxu1  ;;  %v814_v8 = vmax.f32 %v752_v51, 0.0 }
 0x39c   :  { %v3149_v13 = vadd.f32 %v2533_v11, %v2102_v5  ;;  %v826_v14 = vmax.f32 %v3144_v9, 0.0  ;;  %v844_v21 = vmax.f32 %v828_v12, 0.0  ;;  %v850_v45 = vpack.c.bf16 %v839_v42, %v838_v41  ;;  %v2829_v9 = vld [vmem:[%s3535_s7 + $0x48] sm:$0xff]  }
 0x39d   :  { %v802_v56 = vpop.f32.mrf.mxu1  ;;  %v831_v11 = vmax.f32 %v815_v4, 0.0 }
 0x39e   :  { %v829_v15 = vmax.f32 %v3149_v13, 0.0  ;;  %v3155_v1 = vadd.f32 %v2102_v5, %v802_v56  ;;  %v842_v30 = vmax.f32 %v826_v14, 0.0  ;;  %v847_v56 = vpack.c.bf16 %v833_v2, %v832_v57  ;;  %v2821_v5 = vld [vmem:[%s3533_s5 + $0x48] sm:$0xff]   ;;  %v2830_v13 = vld [vmem:[%s3535_s7 + $0x40] sm:$0xff]  }
 0x39f   :  { %2578 = vmatprep.subr.bf16.mxu1 %v2821_v5 }
 0x3a0   :  { %v845_v16 = vmax.f32 %v829_v15, 0.0  ;;  %v827_v27 = vmax.f32 %v3155_v1, 0.0  ;;  %2579 = vmatpush3.bf16.msra.mxu1 %v2821_v5 }
 0x3a2   :  { %v843_v31 = vmax.f32 %v827_v27, 0.0  ;;  %v853_v47 = vpack.c.bf16 %v845_v16, %v844_v21  ;;  %v830_v21 = vmax.f32 %v814_v8, 0.0 }
 0x3a4   :  { %2534 = vmatprep.subr.bf16.mxu0 %v853_v47  ;;  %v852_v55 = vpack.c.bf16 %v843_v31, %v842_v30  ;;  %v846_v16 = vpack.c.bf16 %v831_v11, %v830_v21  ;;  %v2822_v30 = vld [vmem:[%s3533_s5 + $0x40] sm:$0xff]   ;;  %v2823_v31 = vld [vmem:[%s3535_s7 + $0x78] sm:$0xff]  }
 0x3a5   :  { %2535 = vmatpush3.bf16.msra.mxu0 %v853_v47  ;;  %2580 = vmatprep.subr.bf16.mxu1 %v2822_v30  ;;  %v2824_v47 = vld [vmem:[%s3535_s7 + $0x70] sm:$0xff]  }
 0x3a6   :  { %2536 = vmatprep.subr.bf16.mxu0 %v852_v55  ;;  %2581 = vmatpush3.bf16.msra.mxu1 %v2822_v30 }
 0x3a9   :  { %2537 = vmatpush3.bf16.msra.mxu0 %v852_v55  ;;  %v2826_v55 = vld [vmem:[%s3535_s7 + $0x60] sm:$0xff]  }
 0x3aa   :  { %2538 = vmatprep.subr.bf16.mxu0 %v851_v44 }
 0x3ad   :  { %2539 = vmatpush3.bf16.msra.mxu0 %v851_v44  ;;  %v2112_v44 = vld [vmem:[%s3536_s4 + $0x1] ss:$0 sm:$0xff] }
 0x3ae   :  { %2540 = vmatprep.subr.bf16.mxu0 %v850_v45  ;;  %v961_v46 = vmul.f32 %v2112_v44, %v816_v0  ;;  %v962_v36 = vmul.f32 %v2112_v44, %v817_v60  ;;  %v959_v50 = vmul.f32 %v2112_v44, %v814_v8  ;;  %v960_v61 = vmul.f32 %v2112_v44, %v815_v4 }
 0x3af   :  { %v966_v0 = vmul.f32 %v2112_v44, %v821_v37  ;;  %v963_v4 = vmul.f32 %v2112_v44, %v818_v58  ;;  %v969_v43 = vmul.f32 %v2112_v44, %v824_v28  ;;  %v970_v37 = vmul.f32 %v2112_v44, %v825_v18 }
 0x3b0   :  { %v967_v39 = vmul.f32 %v2112_v44, %v822_v35  ;;  %v973_v10 = vmul.f32 %v2112_v44, %v828_v12  ;;  %v974_v18 = vmul.f32 %v2112_v44, %v829_v15  ;;  %v971_v62 = vmul.f32 %v2112_v44, %v826_v14  ;;  %v2828_v12 = vld [vmem:[%s3535_s7 + $0x50] sm:$0xff]   ;;  %v2130_v15 = vld [vmem:[%s3537_s6 + $0x1] ss:$0 sm:$0xff] }
 0x3b1   :  { %2541 = vmatpush3.bf16.msra.mxu0 %v850_v45 }
 0x3b2   :  { %2542 = vmatprep.subr.bf16.mxu0 %v849_v63 }
 0x3b5   :  { %2543 = vmatpush3.bf16.msra.mxu0 %v849_v63 }
 0x3b6   :  { %2544 = vmatprep.subr.bf16.mxu0 %v848_v6 }
 0x3b9   :  { %2545 = vmatpush3.bf16.msra.mxu0 %v848_v6 }
 0x3ba   :  { %2546 = vmatprep.subr.bf16.mxu0 %v847_v56 }
 0x3bd   :  { %2547 = vmatpush3.bf16.msra.mxu0 %v847_v56  ;;  %v965_v56 = vmul.f32 %v2112_v44, %v820_v38 }
 0x3be   :  { %2548 = vmatprep.subr.bf16.mxu0 %v846_v16 }
 0x3c1   :  { %2549 = vmatpush3.bf16.msra.mxu0 %v846_v16  ;;  %v964_v16 = vmul.f32 %v2112_v44, %v819_v48 }
 0x3c2   :  { %2598 = vmatprep.subr.bf16.mxu0 %v2823_v31 }
 0x3c4   :  { %2551 = vmatmul.mubr.bf16.vlgmr.msra.gmra.mxu0 %v3038_v19 }
 0x3c5   :  { %2554 = vmatprep.mubr.bf16.mxu0 %v3040_v20  ;;  %2599 = vmatpush3.bf16.msra.mxu0 %v2823_v31 }
 0x3c6   :  { %2600 = vmatprep.subr.bf16.mxu0 %v2824_v47 }
 0x3c9   :  { %2601 = vmatpush3.bf16.msra.mxu0 %v2824_v47 }
 0x3ca   :  { %2602 = vmatprep.subr.bf16.mxu0 %v2825_v32 }
 0x3cc   :  { %2555 = vmatmul.mubr.bf16.gmra.mxu0 %v3047_v22 }
 0x3cd   :  { %2558 = vmatprep.mubr.bf16.mxu0 %v3049_v23  ;;  %2603 = vmatpush3.bf16.msra.mxu0 %v2825_v32  ;;  %v968_v32 = vmul.f32 %v2112_v44, %v823_v33 }
 0x3ce   :  { %2604 = vmatprep.subr.bf16.mxu0 %v2826_v55 }
 0x3d1   :  { %2605 = vmatpush3.bf16.msra.mxu0 %v2826_v55 }
 0x3d2   :  { %2606 = vmatprep.subr.bf16.mxu0 %v2827_v52 }
 0x3d4   :  { %2559 = vmatmul.mubr.bf16.gmra.mxu0 %v3056_v24 }
 0x3d5   :  { %2562 = vmatprep.mubr.bf16.mxu0 %v3058_v25  ;;  %2607 = vmatpush3.bf16.msra.mxu0 %v2827_v52 }
 0x3d6   :  { %2608 = vmatprep.subr.bf16.mxu0 %v2828_v12 }
 0x3d9   :  { %2609 = vmatpush3.bf16.msra.mxu0 %v2828_v12 }
 0x3da   :  { %2610 = vmatprep.subr.bf16.mxu0 %v2829_v9 }
 0x3dc   :  { %2563 = vmatmul.mubr.bf16.gmra.mxu0 %v3062_v26 }
 0x3dd   :  { %2611 = vmatpush3.bf16.msra.mxu0 %v2829_v9 }
 0x3de   :  { %2612 = vmatprep.subr.bf16.mxu0 %v2830_v13 }
 0x3e1   :  { %2613 = vmatpush3.bf16.msra.mxu0 %v2830_v13 }
 0x484   :  { %v2552_v42 = vpop.f32.mrf.mxu0 }
 0x485   :  { %v977_v49 = vadd.f32 %v2552_v42, %v961_v46 }
 0x486   :  { %v888_v41 = vpop.f32.mrf.mxu0 }
 0x487   :  { %v975_v51 = vadd.f32 %v959_v50, %v888_v41 }
 0x488   :  { %v2553_v45 = vpop.f32.mrf.mxu0 }
 0x489   :  { %v978_v54 = vadd.f32 %v2553_v45, %v962_v36  ;;  %v972_v36 = vmul.f32 %v2112_v44, %v827_v27 }
 0x48a   :  { %v891_v63 = vpop.f32.mrf.mxu0 }
 0x48b   :  { %v992_v3 = vpack.c.bf16 %v978_v54, %v977_v49  ;;  %v976_v2 = vadd.f32 %v960_v61, %v891_v63 }
 0x48c   :  { %v2556_v6 = vpop.f32.mrf.mxu0 }
 0x48d   :  { %v991_v57 = vpack.c.bf16 %v976_v2, %v975_v51  ;;  %v981_v21 = vadd.f32 %v2556_v6, %v965_v56 }
 0x48e   :  { %v904_v11 = vpop.f32.mrf.mxu0 }
 0x48f   :  { %2582 = vmatprep.mubr.bf16.mxu1 %v991_v57  ;;  %v979_v5 = vadd.f32 %v963_v4, %v904_v11 }
 0x490   :  { %v2557_v60 = vpop.f32.mrf.mxu0  ;;  %2583 = vmatmul.mubr.bf16.vlgmr.msra.gmra.mxu1 %v992_v3 }
 0x491   :  { %v982_v8 = vadd.f32 %v2557_v60, %v966_v0 }
 0x492   :  { %v907_v53 = vpop.f32.mrf.mxu0 }
 0x493   :  { %v994_v30 = vpack.c.bf16 %v982_v8, %v981_v21  ;;  %v980_v31 = vadd.f32 %v964_v16, %v907_v53 }
 0x494   :  { %v2560_v34 = vpop.f32.mrf.mxu0 }
 0x495   :  { %v993_v38 = vpack.c.bf16 %v980_v31, %v979_v5  ;;  %v985_v58 = vadd.f32 %v2560_v34, %v969_v43 }
 0x496   :  { %v920_v47 = vpop.f32.mrf.mxu0 }
 0x497   :  { %2586 = vmatprep.mubr.bf16.mxu1 %v993_v38  ;;  %v983_v52 = vadd.f32 %v967_v39, %v920_v47 }
 0x498   :  { %v2561_v40 = vpop.f32.mrf.mxu0  ;;  %2587 = vmatmul.mubr.bf16.gmra.mxu1 %v994_v30 }
 0x499   :  { %v986_v48 = vadd.f32 %v2561_v40, %v970_v37 }
 0x49a   :  { %v923_v55 = vpop.f32.mrf.mxu0 }
 0x49b   :  { %v996_v42 = vpack.c.bf16 %v986_v48, %v985_v58  ;;  %v984_v41 = vadd.f32 %v968_v32, %v923_v55 }
 0x49c   :  { %v2564_v59 = vpop.f32.mrf.mxu0 }
 0x49d   :  { %v995_v28 = vpack.c.bf16 %v984_v41, %v983_v52  ;;  %v989_v35 = vadd.f32 %v2564_v59, %v973_v10 }
 0x49e   :  { %v936_v46 = vpop.f32.mrf.mxu0 }
 0x49f   :  { %2590 = vmatprep.mubr.bf16.mxu1 %v995_v28  ;;  %v987_v49 = vadd.f32 %v971_v62, %v936_v46 }
 0x4a0   :  { %v2565_v29 = vpop.f32.mrf.mxu0  ;;  %2591 = vmatmul.mubr.bf16.gmra.mxu1 %v996_v42 }
 0x4a1   :  { %v990_v33 = vadd.f32 %v2565_v29, %v974_v18 }
 0x4a2   :  { %v939_v45 = vpop.f32.mrf.mxu0 }
 0x4a3   :  { %v998_v50 = vpack.c.bf16 %v990_v33, %v989_v35  ;;  %v988_v54 = vadd.f32 %v972_v36, %v939_v45 }
 0x4a5   :  { %v997_v7 = vpack.c.bf16 %v988_v54, %v987_v49 }
 0x4a7   :  { %2594 = vmatprep.mubr.bf16.mxu1 %v997_v7 }
 0x4a8   :  { %2595 = vmatmul.mubr.bf16.gmra.mxu1 %v998_v50 }
 0x4a9   :  { %2646 = vmatprep.mubr.bf16.mxu1 %v2968_v17 }
 0x550   :  { %v2584_v14 = vpop.f32.mrf.mxu1 }
 0x551   :  { %v1115_v61 = vadd.f32 %v2584_v14, %v2130_v15  ;;  %v2831_v14 = vld [vmem:[%s3533_s5 + $0xb8] sm:$0xff]  }
 0x552   :  { %v1106_v17 = vpop.f32.mrf.mxu1  ;;  %2662 = vmatprep.subr.bf16.mxu0 %v2831_v14 }
 0x553   :  { %v1107_v27 = vadd.f32 %v2130_v15, %v1106_v17  ;;  %v1171_v11 = vmax.f32 %v1115_v61, 0.0  ;;  %v2832_v17 = vld [vmem:[%s3533_s5 + $0xb0] sm:$0xff]  }
 0x554   :  { %v2585_v1 = vpop.f32.mrf.mxu1 }
 0x555   :  { %v1118_v44 = vadd.f32 %v2585_v1, %v2130_v15  ;;  %v1169_v6 = vmax.f32 %v1107_v27, 0.0  ;;  %v2834_v1 = vld [vmem:[%s3533_s5 + $0xa0] sm:$0xff]   ;;  %v2835_v27 = vld [vmem:[%s3533_s5 + $0x98] sm:$0xff]  }
 0x556   :  { %v1109_v63 = vpop.f32.mrf.mxu1 }
 0x557   :  { %v1110_v51 = vadd.f32 %v2130_v15, %v1109_v63  ;;  %v1172_v3 = vmax.f32 %v1118_v44, 0.0 }
 0x558   :  { %v2588_v2 = vpop.f32.mrf.mxu1 }
 0x559   :  { %v1170_v57 = vmax.f32 %v1110_v51, 0.0  ;;  %v1186_v60 = vpack.c.bf16 %v1172_v3, %v1171_v11  ;;  %v1131_v16 = vadd.f32 %v2588_v2, %v2130_v15 }
 0x55a   :  { %v1122_v56 = vpop.f32.mrf.mxu1 }
 0x55b   :  { %v1185_v0 = vpack.c.bf16 %v1170_v57, %v1169_v6  ;;  %v1123_v4 = vadd.f32 %v2130_v15, %v1122_v56  ;;  %v1175_v47 = vmax.f32 %v1131_v16, 0.0 }
 0x55c   :  { %v2589_v21 = vpop.f32.mrf.mxu1 }
 0x55d   :  { %v1134_v8 = vadd.f32 %v2589_v21, %v2130_v15  ;;  %2614 = vmatprep.mubr.bf16.mxu0 %v1185_v0  ;;  %v1173_v34 = vmax.f32 %v1123_v4, 0.0  ;;  %v2156_v21 = vld [vmem:[%s3538_s8 + $0x1] ss:$0 sm:$0xff] }
 0x55e   :  { %v1125_v53 = vpop.f32.mrf.mxu1  ;;  %2615 = vmatmul.mubr.bf16.vlgmr.msra.gmra.mxu0 %v1186_v60 }
 0x55f   :  { %v1126_v5 = vadd.f32 %v2130_v15, %v1125_v53  ;;  %v1176_v30 = vmax.f32 %v1134_v8, 0.0  ;;  %2663 = vmatpush3.bf16.msra.mxu0 %v2831_v14 }
 0x560   :  { %v2592_v31 = vpop.f32.mrf.mxu1  ;;  %2664 = vmatprep.subr.bf16.mxu0 %v2832_v17 }
 0x561   :  { %v1174_v38 = vmax.f32 %v1126_v5, 0.0  ;;  %v1188_v40 = vpack.c.bf16 %v1176_v30, %v1175_v47  ;;  %v1147_v32 = vadd.f32 %v2592_v31, %v2130_v15 }
 0x562   :  { %v1138_v43 = vpop.f32.mrf.mxu1 }
 0x563   :  { %v1187_v37 = vpack.c.bf16 %v1174_v38, %v1173_v34  ;;  %v1139_v39 = vadd.f32 %v2130_v15, %v1138_v43  ;;  %v1179_v46 = vmax.f32 %v1147_v32, 0.0  ;;  %2665 = vmatpush3.bf16.msra.mxu0 %v2832_v17 }
 0x564   :  { %v2593_v58 = vpop.f32.mrf.mxu1 }
 0x565   :  { %v1150_v48 = vadd.f32 %v2593_v58, %v2130_v15  ;;  %2618 = vmatprep.mubr.bf16.mxu0 %v1187_v37  ;;  %v1177_v59 = vmax.f32 %v1139_v39, 0.0 }
 0x566   :  { %v1141_v55 = vpop.f32.mrf.mxu1  ;;  %2619 = vmatmul.mubr.bf16.gmra.mxu0 %v1188_v40 }
 0x567   :  { %v1142_v52 = vadd.f32 %v2130_v15, %v1141_v55  ;;  %v1180_v42 = vmax.f32 %v1150_v48, 0.0 }
 0x568   :  { %v2596_v41 = vpop.f32.mrf.mxu1 }
 0x569   :  { %v1178_v28 = vmax.f32 %v1142_v52, 0.0  ;;  %v1190_v29 = vpack.c.bf16 %v1180_v42, %v1179_v46  ;;  %v1163_v36 = vadd.f32 %v2596_v41, %v2130_v15 }
 0x56a   :  { %v1154_v10 = vpop.f32.mrf.mxu1 }
 0x56b   :  { %v1189_v18 = vpack.c.bf16 %v1178_v28, %v1177_v59  ;;  %v1155_v62 = vadd.f32 %v2130_v15, %v1154_v10  ;;  %v1183_v12 = vmax.f32 %v1163_v36, 0.0 }
 0x56c   :  { %v2597_v35 = vpop.f32.mrf.mxu1 }
 0x56d   :  { %v1166_v33 = vadd.f32 %v2597_v35, %v2130_v15  ;;  %2622 = vmatprep.mubr.bf16.mxu0 %v1189_v18  ;;  %v1181_v54 = vmax.f32 %v1155_v62, 0.0 }
 0x56e   :  { %v1157_v45 = vpop.f32.mrf.mxu1  ;;  %2623 = vmatmul.mubr.bf16.gmra.mxu0 %v1190_v29 }
 0x56f   :  { %v1158_v49 = vadd.f32 %v2130_v15, %v1157_v45  ;;  %v1184_v50 = vmax.f32 %v1166_v33, 0.0  ;;  %v2833_v15 = vld [vmem:[%s3533_s5 + $0xa8] sm:$0xff]  }
 0x570   :  { %2666 = vmatprep.subr.bf16.mxu0 %v2833_v15 }
 0x571   :  { %v1182_v7 = vmax.f32 %v1158_v49, 0.0  ;;  %v1192_v13 = vpack.c.bf16 %v1184_v50, %v1183_v12  ;;  %2667 = vmatpush3.bf16.msra.mxu0 %v2833_v15 }
 0x572   :  { %2668 = vmatprep.subr.bf16.mxu0 %v2834_v1 }
 0x573   :  { %v1191_v9 = vpack.c.bf16 %v1182_v7, %v1181_v54 }
 0x575   :  { %2626 = vmatprep.mubr.bf16.mxu0 %v1191_v9  ;;  %2669 = vmatpush3.bf16.msra.mxu0 %v2834_v1 }
 0x576   :  { %2627 = vmatmul.mubr.bf16.gmra.mxu0 %v1192_v13  ;;  %2670 = vmatprep.subr.bf16.mxu0 %v2835_v27 }
 0x579   :  { %2671 = vmatpush3.bf16.msra.mxu0 %v2835_v27 }
 0x61e   :  { %v2616_v44 = vpop.f32.mrf.mxu0 }
 0x61f   :  { %v3359_v15 = vadd.f32 %v2616_v44, %v2156_v21 }
 0x620   :  { %v3299_v61 = vpop.f32.mrf.mxu0 }
 0x621   :  { %v1301_v44 = vadd.f32 %v2156_v21, %v3299_v61  ;;  %v2836_v61 = vld [vmem:[%s3533_s5 + $0x90] sm:$0xff]  }
 0x622   :  { %v2617_v63 = vpop.f32.mrf.mxu0  ;;  %2672 = vmatprep.subr.bf16.mxu0 %v2836_v61 }
 0x623   :  { %v3354_v9 = vadd.f32 %v2617_v63, %v2156_v21  ;;  %2673 = vmatpush3.bf16.msra.mxu0 %v2836_v61 }
 0x624   :  { %v1303_v51 = vpop.f32.mrf.mxu0 }
 0x626   :  { %v2620_v3 = vpop.f32.mrf.mxu0 }
 0x627   :  { %v3339_v35 = vadd.f32 %v2620_v3, %v2156_v21  ;;  %v1366_v3 = vmax.f32 %v3354_v9, 0.0 }
 0x628   :  { %v1316_v2 = vpop.f32.mrf.mxu0 }
 0x629   :  { %v1369_v54 = vmax.f32 %v3339_v35, 0.0  ;;  %v3350_v7 = vadd.f32 %v2156_v21, %v1316_v2  ;;  %v3365_v2 = vadd.f32 %v2156_v21, %v1303_v51 }
 0x62a   :  { %v2621_v6 = vpop.f32.mrf.mxu0 }
 0x62b   :  { %v3334_v46 = vadd.f32 %v2621_v6, %v2156_v21  ;;  %v1385_v1 = vmax.f32 %v1369_v54, 0.0  ;;  %v1367_v27 = vmax.f32 %v3350_v7, 0.0 }
 0x62c   :  { %v1319_v57 = vpop.f32.mrf.mxu0 }
 0x62d   :  { %v1370_v36 = vmax.f32 %v3334_v46, 0.0  ;;  %v3345_v45 = vadd.f32 %v2156_v21, %v1319_v57  ;;  %v1365_v57 = vmax.f32 %v3359_v15, 0.0 }
 0x62e   :  { %v2624_v11 = vpop.f32.mrf.mxu0 }
 0x62f   :  { %v3313_v38 = vadd.f32 %v2624_v11, %v2156_v21  ;;  %v1386_v13 = vmax.f32 %v1370_v36, 0.0  ;;  %v1368_v14 = vmax.f32 %v3345_v45, 0.0  ;;  %v1383_v11 = vmax.f32 %v1367_v27, 0.0 }
 0x630   :  { %v1332_v56 = vpop.f32.mrf.mxu0  ;;  %v1381_v51 = vmax.f32 %v1365_v57, 0.0 }
 0x631   :  { %v1373_v52 = vmax.f32 %v3313_v38, 0.0  ;;  %v3328_v42 = vadd.f32 %v2156_v21, %v1332_v56  ;;  %v1384_v63 = vmax.f32 %v1368_v14, 0.0  ;;  %v1398_v6 = vpack.c.bf16 %v1386_v13, %v1385_v1 }
 0x632   :  { %v2625_v0 = vpop.f32.mrf.mxu0  ;;  %v1382_v56 = vmax.f32 %v1366_v3, 0.0 }
 0x633   :  { %v3308_v5 = vadd.f32 %v2625_v0, %v2156_v21  ;;  %v1389_v62 = vmax.f32 %v1373_v52, 0.0  ;;  %v1371_v33 = vmax.f32 %v3328_v42, 0.0  ;;  %v1364_v0 = vmax.f32 %v3365_v2, 0.0 }
 0x634   :  { %v1335_v60 = vpop.f32.mrf.mxu0 }
 0x635   :  { %v1374_v58 = vmax.f32 %v3308_v5, 0.0  ;;  %v3320_v39 = vadd.f32 %v2156_v21, %v1335_v60  ;;  %v1387_v12 = vmax.f32 %v1371_v33, 0.0  ;;  %v1397_v60 = vpack.c.bf16 %v1384_v63, %v1383_v11 }
 0x636   :  { %v2628_v4 = vpop.f32.mrf.mxu0 }
 0x637   :  { %v3304_v8 = vadd.f32 %v2628_v4, %v2156_v21  ;;  %v1390_v10 = vmax.f32 %v1374_v58, 0.0  ;;  %v1372_v18 = vmax.f32 %v3320_v39, 0.0  ;;  %v1363_v4 = vmax.f32 %v1301_v44, 0.0 }
 0x638   :  { %v1348_v16 = vpop.f32.mrf.mxu0 }
 0x639   :  { %v3306_v53 = vadd.f32 %v2156_v21, %v1348_v16  ;;  %v1377_v31 = vmax.f32 %v3304_v8, 0.0  ;;  %v1388_v49 = vmax.f32 %v1372_v18, 0.0  ;;  %v1400_v50 = vpack.c.bf16 %v1390_v10, %v1389_v62 }
 0x63a   :  { %v2629_v30 = vpop.f32.mrf.mxu0  ;;  %v1380_v16 = vmax.f32 %v1364_v0, 0.0 }
 0x63b   :  { %v3311_v34 = vadd.f32 %v2629_v30, %v2156_v21  ;;  %v1375_v43 = vmax.f32 %v3306_v53, 0.0  ;;  %v1393_v48 = vmax.f32 %v1377_v31, 0.0  ;;  %v1399_v17 = vpack.c.bf16 %v1388_v49, %v1387_v12  ;;  %v2845_v53 = vld [vmem:[%s3535_s7 + $0x88] sm:$0xff]  }
 0x63c   :  { %v1351_v47 = vpop.f32.mrf.mxu0  ;;  %v1396_v30 = vpack.c.bf16 %v1382_v56, %v1381_v51 }
 0x63d   :  { %v1378_v37 = vmax.f32 %v3311_v34, 0.0  ;;  %v3317_v40 = vadd.f32 %v2156_v21, %v1351_v47  ;;  %v1391_v41 = vmax.f32 %v1375_v43, 0.0  ;;  %v1379_v47 = vmax.f32 %v1363_v4, 0.0  ;;  %v2846_v34 = vld [vmem:[%s3535_s7 + $0x80] sm:$0xff]  }
 0x63f   :  { %v1394_v32 = vmax.f32 %v1378_v37, 0.0  ;;  %v1376_v55 = vmax.f32 %v3317_v40, 0.0  ;;  %v2184_v40 = vld [vmem:[%s3537_s6 + $0x2] ss:$0 sm:$0xff] }
 0x641   :  { %v1392_v59 = vmax.f32 %v1376_v55, 0.0  ;;  %v1402_v28 = vpack.c.bf16 %v1394_v32, %v1393_v48  ;;  %v1395_v48 = vpack.c.bf16 %v1380_v16, %v1379_v47  ;;  %v2166_v32 = vld [vmem:[%s3536_s4 + $0x2] ss:$0 sm:$0xff] }
 0x642   :  { %v1508_v62 = vmul.f32 %v2166_v32, %v1363_v4  ;;  %v1514_v63 = vmul.f32 %v2166_v32, %v1369_v54  ;;  %v1512_v44 = vmul.f32 %v2166_v32, %v1367_v27  ;;  %v1513_v56 = vmul.f32 %v2166_v32, %v1368_v14 }
 0x643   :  { %2630 = vmatprep.subr.bf16.mxu1 %v1402_v28  ;;  %v1401_v29 = vpack.c.bf16 %v1392_v59, %v1391_v41  ;;  %v1510_v59 = vmul.f32 %v2166_v32, %v1365_v57  ;;  %v1518_v46 = vmul.f32 %v2166_v32, %v1373_v52  ;;  %v1516_v45 = vmul.f32 %v2166_v32, %v1371_v33 }
 0x644   :  { %2631 = vmatpush3.bf16.msra.mxu1 %v1402_v28  ;;  %v1511_v28 = vmul.f32 %v2166_v32, %v1366_v3  ;;  %v1522_v5 = vmul.f32 %v2166_v32, %v1377_v31  ;;  %v1520_v39 = vmul.f32 %v2166_v32, %v1375_v43  ;;  %v2844_v31 = vld [vmem:[%s3535_s7 + $0x90] sm:$0xff]  }
 0x645   :  { %2632 = vmatprep.subr.bf16.mxu1 %v1401_v29 }
 0x648   :  { %2633 = vmatpush3.bf16.msra.mxu1 %v1401_v29 }
 0x649   :  { %2634 = vmatprep.subr.bf16.mxu1 %v1400_v50 }
 0x64c   :  { %2635 = vmatpush3.bf16.msra.mxu1 %v1400_v50  ;;  %v1509_v50 = vmul.f32 %v2166_v32, %v1364_v0 }
 0x64d   :  { %2636 = vmatprep.subr.bf16.mxu1 %v1399_v17 }
 0x650   :  { %2637 = vmatpush3.bf16.msra.mxu1 %v1399_v17 }
 0x651   :  { %2638 = vmatprep.subr.bf16.mxu1 %v1398_v6 }
 0x654   :  { %2639 = vmatpush3.bf16.msra.mxu1 %v1398_v6  ;;  %v1515_v6 = vmul.f32 %v2166_v32, %v1370_v36  ;;  %v1519_v36 = vmul.f32 %v2166_v32, %v1374_v58  ;;  %v1523_v58 = vmul.f32 %v2166_v32, %v1378_v37 }
 0x655   :  { %2640 = vmatprep.subr.bf16.mxu1 %v1397_v60 }
 0x658   :  { %2641 = vmatpush3.bf16.msra.mxu1 %v1397_v60 }
 0x659   :  { %2642 = vmatprep.subr.bf16.mxu1 %v1396_v30 }
 0x65c   :  { %2643 = vmatpush3.bf16.msra.mxu1 %v1396_v30  ;;  %v1517_v30 = vmul.f32 %v2166_v32, %v1372_v18 }
 0x65d   :  { %2644 = vmatprep.subr.bf16.mxu1 %v1395_v48 }
 0x660   :  { %2645 = vmatpush3.bf16.msra.mxu1 %v1395_v48 }
 0x663   :  { %2647 = vmatmul.mubr.bf16.vlgmr.msra.gmra.mxu1 %v3038_v19  ;;  %v2837_v19 = vld [vmem:[%s3533_s5 + $0x88] sm:$0xff]  }
 0x664   :  { %2650 = vmatprep.mubr.bf16.mxu1 %v3040_v20  ;;  %2674 = vmatprep.subr.bf16.mxu0 %v2837_v19  ;;  %v2838_v20 = vld [vmem:[%s3533_s5 + $0x80] sm:$0xff]  }
 0x665   :  { %2675 = vmatpush3.bf16.msra.mxu0 %v2837_v19 }
 0x666   :  { %2676 = vmatprep.subr.bf16.mxu0 %v2838_v20 }
 0x669   :  { %2677 = vmatpush3.bf16.msra.mxu0 %v2838_v20 }
 0x66b   :  { %2651 = vmatmul.mubr.bf16.gmra.mxu1 %v3047_v22  ;;  %v2839_v22 = vld [vmem:[%s3535_s7 + $0xb8] sm:$0xff]  }
 0x66c   :  { %2654 = vmatprep.mubr.bf16.mxu1 %v3049_v23  ;;  %v2840_v23 = vld [vmem:[%s3535_s7 + $0xb0] sm:$0xff]   ;;  %2694 = vmatprep.subr.bf16.mxu1 %v2839_v22 }
 0x66d   :  { %2695 = vmatpush3.bf16.msra.mxu1 %v2839_v22  ;;  %v1521_v22 = vmul.f32 %v2166_v32, %v1376_v55 }
 0x66e   :  { %2696 = vmatprep.subr.bf16.mxu1 %v2840_v23 }
 0x671   :  { %2697 = vmatpush3.bf16.msra.mxu1 %v2840_v23 }
 0x673   :  { %2655 = vmatmul.mubr.bf16.gmra.mxu1 %v3056_v24  ;;  %v2841_v24 = vld [vmem:[%s3535_s7 + $0xa8] sm:$0xff]  }
 0x674   :  { %2658 = vmatprep.mubr.bf16.mxu1 %v3058_v25  ;;  %2698 = vmatprep.subr.bf16.mxu1 %v2841_v24  ;;  %v2842_v25 = vld [vmem:[%s3535_s7 + $0xa0] sm:$0xff]  }
 0x675   :  { %2699 = vmatpush3.bf16.msra.mxu1 %v2841_v24 }
 0x676   :  { %2700 = vmatprep.subr.bf16.mxu1 %v2842_v25 }
 0x679   :  { %2701 = vmatpush3.bf16.msra.mxu1 %v2842_v25 }
 0x67b   :  { %2659 = vmatmul.mubr.bf16.gmra.mxu1 %v3062_v26  ;;  %v2843_v26 = vld [vmem:[%s3535_s7 + $0x98] sm:$0xff]  }
 0x67c   :  { %2702 = vmatprep.subr.bf16.mxu1 %v2843_v26 }
 0x67d   :  { %2703 = vmatpush3.bf16.msra.mxu1 %v2843_v26 }
 0x67e   :  { %2704 = vmatprep.subr.bf16.mxu1 %v2844_v31 }
 0x681   :  { %2705 = vmatpush3.bf16.msra.mxu1 %v2844_v31  ;;  %v1989_v31 = vld [vmem:[%s3539_s10 + $0x60] sm:$0xff] }
 0x682   :  { %2706 = vmatprep.subr.bf16.mxu1 %v2845_v53 }
 0x685   :  { %2707 = vmatpush3.bf16.msra.mxu1 %v2845_v53  ;;  %v1988_v53 = vld [vmem:[%s3539_s10 + $0x58] sm:$0xff] }
 0x686   :  { %2708 = vmatprep.subr.bf16.mxu1 %v2846_v34 }
 0x689   :  { %2709 = vmatpush3.bf16.msra.mxu1 %v2846_v34  ;;  %v1987_v34 = vld [vmem:[%s3539_s10 + $0x50] sm:$0xff] }
 0x723   :  { %v2648_v21 = vpop.f32.mrf.mxu1 }
 0x724   :  { %v1526_v29 = vadd.f32 %v2648_v21, %v1510_v59 }
 0x725   :  { %v1437_v41 = vpop.f32.mrf.mxu1 }
 0x726   :  { %v1524_v9 = vadd.f32 %v1508_v62, %v1437_v41 }
 0x727   :  { %v2649_v10 = vpop.f32.mrf.mxu1 }
 0x728   :  { %v1527_v49 = vadd.f32 %v2649_v10, %v1511_v28 }
 0x729   :  { %v1440_v12 = vpop.f32.mrf.mxu1 }
 0x72a   :  { %v1541_v13 = vpack.c.bf16 %v1527_v49, %v1526_v29  ;;  %v1525_v17 = vadd.f32 %v1509_v50, %v1440_v12 }
 0x72b   :  { %v2652_v15 = vpop.f32.mrf.mxu1 }
 0x72c   :  { %v1540_v1 = vpack.c.bf16 %v1525_v17, %v1524_v9  ;;  %v1530_v57 = vadd.f32 %v2652_v15, %v1514_v63 }
 0x72d   :  { %v1453_v2 = vpop.f32.mrf.mxu1 }
 0x72e   :  { %2678 = vmatprep.mubr.bf16.mxu0 %v1540_v1  ;;  %v1528_v60 = vadd.f32 %v1512_v44, %v1453_v2 }
 0x72f   :  { %v2653_v3 = vpop.f32.mrf.mxu1  ;;  %2679 = vmatmul.mubr.bf16.vlgmr.msra.gmra.mxu0 %v1541_v13 }
 0x730   :  { %v1531_v11 = vadd.f32 %v2653_v3, %v1515_v6 }
 0x731   :  { %v1456_v0 = vpop.f32.mrf.mxu1 }
 0x732   :  { %v1543_v51 = vpack.c.bf16 %v1531_v11, %v1530_v57  ;;  %v1529_v4 = vadd.f32 %v1513_v56, %v1456_v0 }
 0x733   :  { %v2656_v35 = vpop.f32.mrf.mxu1 }
 0x734   :  { %v1542_v54 = vpack.c.bf16 %v1529_v4, %v1528_v60  ;;  %v1534_v27 = vadd.f32 %v2656_v35, %v1518_v46 }
 0x735   :  { %v1469_v16 = vpop.f32.mrf.mxu1 }
 0x736   :  { %2682 = vmatprep.mubr.bf16.mxu0 %v1542_v54  ;;  %v1532_v48 = vadd.f32 %v1516_v45, %v1469_v16 }
 0x737   :  { %v2657_v7 = vpop.f32.mrf.mxu1  ;;  %2683 = vmatmul.mubr.bf16.gmra.mxu0 %v1543_v51 }
 0x738   :  { %v1535_v14 = vadd.f32 %v2657_v7, %v1519_v36 }
 0x739   :  { %v1472_v47 = vpop.f32.mrf.mxu1 }
 0x73a   :  { %v1545_v61 = vpack.c.bf16 %v1535_v14, %v1534_v27  ;;  %v1533_v19 = vadd.f32 %v1517_v30, %v1472_v47 }
 0x73b   :  { %v2660_v38 = vpop.f32.mrf.mxu1 }
 0x73c   :  { %v1544_v52 = vpack.c.bf16 %v1533_v19, %v1532_v48  ;;  %v1538_v33 = vadd.f32 %v2660_v38, %v1522_v5 }
 0x73d   :  { %v1485_v20 = vpop.f32.mrf.mxu1 }
 0x73e   :  { %2686 = vmatprep.mubr.bf16.mxu0 %v1544_v52  ;;  %v1536_v24 = vadd.f32 %v1520_v39, %v1485_v20 }
 0x73f   :  { %v2661_v42 = vpop.f32.mrf.mxu1  ;;  %2687 = vmatmul.mubr.bf16.gmra.mxu0 %v1545_v61 }
 0x740   :  { %v1539_v18 = vadd.f32 %v2661_v42, %v1523_v58 }
 0x741   :  { %v1488_v23 = vpop.f32.mrf.mxu1 }
 0x742   :  { %v1547_v25 = vpack.c.bf16 %v1539_v18, %v1538_v33  ;;  %v1537_v26 = vadd.f32 %v1521_v22, %v1488_v23 }
 0x744   :  { %v1546_v8 = vpack.c.bf16 %v1537_v26, %v1536_v24  ;;  %v2847_v24 = vmov 0.0   ;;  %v1991_v26 = vld [vmem:[%s3539_s10 + $0x70] sm:$0xff] }
 0x745   :  { %2726 = vmatprep.subr.bf16.mxu0 %v2847_v24  ;;  %2746 = vmatprep.subr.mxu1 %v2847_v24 }
 0x746   :  { %2690 = vmatprep.mubr.bf16.mxu0 %v1546_v8  ;;  %v1990_v8 = vld [vmem:[%s3539_s10 + $0x68] sm:$0xff] }
 0x747   :  { %2691 = vmatmul.mubr.bf16.gmra.mxu0 %v1547_v25  ;;  %v1992_v25 = vld [vmem:[%s3539_s10 + $0x78] sm:$0xff] }
 0x748   :  { %2742 = vmatprep.mubr.msk.bf16.mxu0 %vm2848_vm0, %v2847_v24 }
 0x7ef   :  { %v2680_v43 = vpop.f32.mrf.mxu0 }
 0x7f0   :  { %v1664_v41 = vadd.f32 %v2680_v43, %v2184_v40  ;;  %v1986_v43 = vld [vmem:[%s3539_s10 + $0x48] sm:$0xff] }
 0x7f1   :  { %v1655_v37 = vpop.f32.mrf.mxu0 }
 0x7f2   :  { %v1656_v21 = vadd.f32 %v2184_v40, %v1655_v37  ;;  %v1720_v50 = vmax.f32 %v1664_v41, 0.0  ;;  %v1985_v37 = vld [vmem:[%s3539_s10 + $0x40] sm:$0xff]  ;;  %v1980_v41 = vld [vmem:[%s3539_s10 + $0x18] sm:$0xff] }
 0x7f3   :  { %v2681_v55 = vpop.f32.mrf.mxu0 }
 0x7f4   :  { %v1667_v32 = vadd.f32 %v2681_v55, %v2184_v40  ;;  %v1718_v62 = vmax.f32 %v1656_v21, 0.0  ;;  %v1983_v55 = vld [vmem:[%s3539_s10 + $0x30] sm:$0xff]  ;;  %v1982_v21 = vld [vmem:[%s3539_s10 + $0x28] sm:$0xff] }
 0x7f5   :  { %v1658_v59 = vpop.f32.mrf.mxu0 }
 0x7f6   :  { %v1659_v28 = vadd.f32 %v2184_v40, %v1658_v59  ;;  %v1721_v10 = vmax.f32 %v1667_v32, 0.0  ;;  %v1981_v32 = vld [vmem:[%s3539_s10 + $0x20] sm:$0xff]  ;;  %v1979_v59 = vld [vmem:[%s3539_s10 + $0x10] sm:$0xff] }
 0x7f7   :  { %v2684_v29 = vpop.f32.mrf.mxu0 }
 0x7f8   :  { %v1719_v49 = vmax.f32 %v1659_v28, 0.0  ;;  %v1735_v13 = vpack.c.bf16 %v1721_v10, %v1720_v50  ;;  %v1680_v2 = vadd.f32 %v2684_v29, %v2184_v40  ;;  %v1978_v28 = vld [vmem:[%s3539_s10 + $0x8] sm:$0xff] }
 0x7f9   :  { %v1671_v12 = vpop.f32.mrf.mxu0 }
 0x7fa   :  { %v1734_v9 = vpack.c.bf16 %v1719_v49, %v1718_v62  ;;  %v1672_v15 = vadd.f32 %v2184_v40, %v1671_v12  ;;  %v1724_v56 = vmax.f32 %v1680_v2, 0.0 }
 0x7fb   :  { %v2685_v17 = vpop.f32.mrf.mxu0 }
 0x7fc   :  { %v1683_v1 = vadd.f32 %v2685_v17, %v2184_v40  ;;  %2710 = vmatprep.mubr.bf16.mxu1 %v1734_v9  ;;  %v1722_v44 = vmax.f32 %v1672_v15, 0.0 }
 0x7fd   :  { %v1674_v63 = vpop.f32.mrf.mxu0  ;;  %2711 = vmatmul.mubr.bf16.vlgmr.msra.gmra.mxu1 %v1735_v13 }
 0x7fe   :  { %v1675_v6 = vadd.f32 %v2184_v40, %v1674_v63  ;;  %v1725_v3 = vmax.f32 %v1683_v1, 0.0  ;;  %2747 = vmatpush3.msra.mxu1 %v1992_v25 }
 0x7ff   :  { %v2688_v57 = vpop.f32.mrf.mxu0  ;;  %2748 = vmatprep.subr.mxu1 %v2847_v24 }
 0x800   :  { %v1723_v11 = vmax.f32 %v1675_v6, 0.0  ;;  %v1737_v51 = vpack.c.bf16 %v1725_v3, %v1724_v56  ;;  %v1696_v16 = vadd.f32 %v2688_v57, %v2184_v40  ;;  %2749 = vmatpush3.msra.mxu1 %v1991_v26  ;;  %v2210_v6 = vld [vmem:[%s3538_s8 + $0x2] ss:$0 sm:$0xff] }
 0x801   :  { %v1687_v0 = vpop.f32.mrf.mxu0  ;;  %2750 = vmatprep.subr.mxu1 %v2847_v24 }
 0x802   :  { %v1736_v60 = vpack.c.bf16 %v1723_v11, %v1722_v44  ;;  %v1688_v35 = vadd.f32 %v2184_v40, %v1687_v0  ;;  %v1728_v30 = vmax.f32 %v1696_v16, 0.0  ;;  %2751 = vmatpush3.msra.mxu1 %v1990_v8 }
 0x803   :  { %v2689_v4 = vpop.f32.mrf.mxu0  ;;  %2752 = vmatprep.subr.mxu1 %v2847_v24 }
 0x804   :  { %v1699_v54 = vadd.f32 %v2689_v4, %v2184_v40  ;;  %2714 = vmatprep.mubr.bf16.mxu1 %v1736_v60  ;;  %v1726_v45 = vmax.f32 %v1688_v35, 0.0  ;;  %2753 = vmatpush3.msra.mxu1 %v1989_v31 }
 0x805   :  { %v1690_v46 = vpop.f32.mrf.mxu0  ;;  %2715 = vmatmul.mubr.bf16.gmra.mxu1 %v1737_v51  ;;  %2754 = vmatprep.subr.mxu1 %v2847_v24 }
 0x806   :  { %v1691_v36 = vadd.f32 %v2184_v40, %v1690_v46  ;;  %v1729_v7 = vmax.f32 %v1699_v54, 0.0  ;;  %2755 = vmatpush3.msra.mxu1 %v1988_v53 }
 0x807   :  { %v2692_v27 = vpop.f32.mrf.mxu0  ;;  %2756 = vmatprep.subr.mxu1 %v2847_v24 }
 0x808   :  { %v1727_v14 = vmax.f32 %v1691_v36, 0.0  ;;  %v1739_v61 = vpack.c.bf16 %v1729_v7, %v1728_v30  ;;  %v1712_v20 = vadd.f32 %v2692_v27, %v2184_v40  ;;  %2757 = vmatpush3.msra.mxu1 %v1987_v34 }
 0x809   :  { %v1703_v47 = vpop.f32.mrf.mxu0  ;;  %2758 = vmatprep.subr.mxu1 %v2847_v24 }
 0x80a   :  { %v1738_v48 = vpack.c.bf16 %v1727_v14, %v1726_v45  ;;  %v1704_v38 = vadd.f32 %v2184_v40, %v1703_v47  ;;  %v1732_v18 = vmax.f32 %v1712_v20, 0.0  ;;  %2759 = vmatpush3.msra.mxu1 %v1986_v43 }
 0x80b   :  { %v2693_v19 = vpop.f32.mrf.mxu0  ;;  %2760 = vmatprep.subr.mxu1 %v2847_v24 }
 0x80c   :  { %v1715_v52 = vadd.f32 %v2693_v19, %v2184_v40  ;;  %2718 = vmatprep.mubr.bf16.mxu1 %v1738_v48  ;;  %v1730_v33 = vmax.f32 %v1704_v38, 0.0  ;;  %2761 = vmatpush3.msra.mxu1 %v1985_v37 }
 0x80d   :  { %v1706_v5 = vpop.f32.mrf.mxu0  ;;  %2719 = vmatmul.mubr.bf16.gmra.mxu1 %v1739_v61  ;;  %2762 = vmatprep.subr.mxu1 %v2847_v24 }
 0x80e   :  { %v1707_v58 = vadd.f32 %v2184_v40, %v1706_v5  ;;  %v1733_v42 = vmax.f32 %v1715_v52, 0.0  ;;  %v1984_v40 = vld [vmem:[%s3539_s10 + $0x38] sm:$0xff] }
 0x80f   :  { %2763 = vmatpush3.msra.mxu1 %v1984_v40 }
 0x810   :  { %v1731_v39 = vmax.f32 %v1707_v58, 0.0  ;;  %v1741_v23 = vpack.c.bf16 %v1733_v42, %v1732_v18  ;;  %2764 = vmatprep.subr.mxu1 %v2847_v24 }
 0x811   :  { %2765 = vmatpush3.msra.mxu1 %v1983_v55  ;;  %v1928_v55 = vld [vmem:[%s3540_s9] sm:$0xf] }
 0x812   :  { %v1740_v22 = vpack.c.bf16 %v1731_v39, %v1730_v33  ;;  %2766 = vmatprep.subr.mxu1 %v2847_v24 }
 0x813   :  { %2767 = vmatpush3.msra.mxu1 %v1982_v21  ;;  %v1977_v21 = vld [vmem:[%s3539_s10] sm:$0xff] }
 0x814   :  { %2722 = vmatprep.mubr.bf16.mxu1 %v1740_v22  ;;  %2768 = vmatprep.subr.mxu1 %v2847_v24 }
 0x815   :  { %2723 = vmatmul.mubr.bf16.gmra.mxu1 %v1741_v23 }
 0x816   :  { %2778 = vmatprep.mubr.msk.f32.mxu1 %vm2848_vm0, %v2847_v24  ;;  %2769 = vmatpush3.msra.mxu1 %v1981_v32 }
 0x817   :  { %2770 = vmatprep.subr.mxu1 %v2847_v24 }
 0x818   :  { %2771 = vmatpush3.msra.mxu1 %v1980_v41 }
 0x819   :  { %2772 = vmatprep.subr.mxu1 %v2847_v24 }
 0x81a   :  { %2773 = vmatpush3.msra.mxu1 %v1979_v59 }
 0x81b   :  { %2774 = vmatprep.subr.mxu1 %v2847_v24 }
 0x81c   :  { %2775 = vmatpush3.msra.mxu1 %v1978_v28 }
 0x81d   :  { %2776 = vmatprep.subr.mxu1 %v2847_v24 }
 0x81e   :  { %2777 = vmatpush3.msra.mxu1 %v1977_v21 }
 0x8bd   :  { %v2712_v10 = vpop.f32.mrf.mxu1 }
 0x8be   :  { %v1858_v22 = vadd.f32 %v2712_v10, %v2210_v6 }
 0x8bf   :  { %v1849_v29 = vpop.f32.mrf.mxu1 }
 0x8c0   :  { %v1914_v31 = vmax.f32 %v1858_v22, 0.0  ;;  %v1850_v53 = vadd.f32 %v2210_v6, %v1849_v29 }
 0x8c1   :  { %v2713_v62 = vpop.f32.mrf.mxu1 }
 0x8c2   :  { %v1861_v33 = vadd.f32 %v2713_v62, %v2210_v6  ;;  %v1912_v37 = vmax.f32 %v1850_v53, 0.0 }
 0x8c3   :  { %v1852_v49 = vpop.f32.mrf.mxu1 }
 0x8c4   :  { %v1915_v25 = vmax.f32 %v1861_v33, 0.0  ;;  %v1853_v26 = vadd.f32 %v2210_v6, %v1852_v49 }
 0x8c5   :  { %v2716_v50 = vpop.f32.mrf.mxu1 }
 0x8c6   :  { %v1874_v19 = vadd.f32 %v2716_v50, %v2210_v6  ;;  %v1930_v34 = vpack.c.bf16 %v1915_v25, %v1914_v31  ;;  %v1913_v43 = vmax.f32 %v1853_v26, 0.0 }
 0x8c7   :  { %v1865_v12 = vpop.f32.mrf.mxu1 }
 0x8c8   :  { %v1918_v58 = vmax.f32 %v1874_v19, 0.0  ;;  %v1866_v42 = vadd.f32 %v2210_v6, %v1865_v12  ;;  %v1929_v40 = vpack.c.bf16 %v1913_v43, %v1912_v37 }
 0x8c9   :  { %v2717_v9 = vpop.f32.mrf.mxu1 }
 0x8ca   :  { %v1877_v47 = vadd.f32 %v2717_v9, %v2210_v6  ;;  %v1916_v23 = vmax.f32 %v1866_v42, 0.0 }
 0x8cb   :  { %v1868_v13 = vpop.f32.mrf.mxu1 }
 0x8cc   :  { %v1919_v52 = vmax.f32 %v1877_v47, 0.0  ;;  %v1869_v20 = vadd.f32 %v2210_v6, %v1868_v13 }
 0x8cd   :  { %v2720_v17 = vpop.f32.mrf.mxu1 }
 0x8ce   :  { %v1890_v46 = vadd.f32 %v2720_v17, %v2210_v6  ;;  %v1932_v39 = vpack.c.bf16 %v1919_v52, %v1918_v58  ;;  %v1917_v18 = vmax.f32 %v1869_v20, 0.0 }
 0x8cf   :  { %v1881_v15 = vpop.f32.mrf.mxu1 }
 0x8d0   :  { %v1922_v14 = vmax.f32 %v1890_v46, 0.0  ;;  %v1882_v30 = vadd.f32 %v2210_v6, %v1881_v15  ;;  %v1931_v8 = vpack.c.bf16 %v1917_v18, %v1916_v23 }
 0x8d1   :  { %v2721_v1 = vpop.f32.mrf.mxu1 }
 0x8d2   :  { %v1893_v35 = vadd.f32 %v2721_v1, %v2210_v6  ;;  %v1920_v38 = vmax.f32 %v1882_v30, 0.0 }
 0x8d3   :  { %v1884_v2 = vpop.f32.mrf.mxu1 }
 0x8d4   :  { %v1923_v7 = vmax.f32 %v1893_v35, 0.0  ;;  %v1885_v27 = vadd.f32 %v2210_v6, %v1884_v2 }
 0x8d5   :  { %v2724_v63 = vpop.f32.mrf.mxu1 }
 0x8d6   :  { %v1906_v57 = vadd.f32 %v2724_v63, %v2210_v6  ;;  %v1934_v48 = vpack.c.bf16 %v1923_v7, %v1922_v14  ;;  %v1921_v61 = vmax.f32 %v1885_v27, 0.0 }
 0x8d7   :  { %v1897_v3 = vpop.f32.mrf.mxu1 }
 0x8d8   :  { %v1926_v0 = vmax.f32 %v1906_v57, 0.0  ;;  %v1898_v60 = vadd.f32 %v2210_v6, %v1897_v3  ;;  %v1933_v5 = vpack.c.bf16 %v1921_v61, %v1920_v38 }
 0x8d9   :  { %v2725_v44 = vpop.f32.mrf.mxu1 }
 0x8da   :  { %v1909_v11 = vadd.f32 %v2725_v44, %v2210_v6  ;;  %v1924_v36 = vmax.f32 %v1898_v60, 0.0 }
 0x8db   :  { %v1900_v56 = vpop.f32.mrf.mxu1 }
 0x8dc   :  { %v1927_v51 = vmax.f32 %v1909_v11, 0.0  ;;  %v1901_v4 = vadd.f32 %v2210_v6, %v1900_v56 }
 0x8de   :  { %v1936_v54 = vpack.c.bf16 %v1927_v51, %v1926_v0  ;;  %v1925_v16 = vmax.f32 %v1901_v4, 0.0 }
 0x8e0   :  { %2727 = vmatpush3.bf16.msra.mxu0 %v1936_v54  ;;  %v1935_v45 = vpack.c.bf16 %v1925_v16, %v1924_v36 }
 0x8e1   :  { %2728 = vmatprep.subr.bf16.mxu0 %v2847_v24 }
 0x8e4   :  { %2729 = vmatpush3.bf16.msra.mxu0 %v1935_v45 }
 0x8e5   :  { %2730 = vmatprep.subr.bf16.mxu0 %v2847_v24 }
 0x8e8   :  { %2731 = vmatpush3.bf16.msra.mxu0 %v1934_v48 }
 0x8e9   :  { %2732 = vmatprep.subr.bf16.mxu0 %v2847_v24 }
 0x8ec   :  { %2733 = vmatpush3.bf16.msra.mxu0 %v1933_v5 }
 0x8ed   :  { %2734 = vmatprep.subr.bf16.mxu0 %v2847_v24 }
 0x8f0   :  { %2735 = vmatpush3.bf16.msra.mxu0 %v1932_v39 }
 0x8f1   :  { %2736 = vmatprep.subr.bf16.mxu0 %v2847_v24 }
 0x8f4   :  { %2737 = vmatpush3.bf16.msra.mxu0 %v1931_v8 }
 0x8f5   :  { %2738 = vmatprep.subr.bf16.mxu0 %v2847_v24 }
 0x8f8   :  { %2739 = vmatpush3.bf16.msra.mxu0 %v1930_v34 }
 0x8f9   :  { %2740 = vmatprep.subr.bf16.mxu0 %v2847_v24  ;;  %v2219_v24 = vld [vmem:[%s3541_s11] ss:$0 sm:$0xff] }
 0x8fc   :  { %2741 = vmatpush3.bf16.msra.mxu0 %v1929_v40 }
 0x8ff   :  { %2743 = vmatmul.mubr.bf16.vlgmr.msra.gmra.mxu0 %v1928_v55 }
 0x9bf   :  { %v1971_v32 = vpop.f32.mrf.mxu0 }
 0x9c0   :  { %2779 = vmatmul.mubr.f32.vlgmr.msra.gmra.mxu1 %v1971_v32 }
 0x9c1   :  { %v2744_v41 = vpop.f32.mrf.mxu0 }
 0x9c3   :  { %v1974_v59 = vpop.f32.mrf.mxu0 }
 0x9c5   :  { %v2745_v28 = vpop.f32.mrf.mxu0 }
 0xa80   :  { %v2066_v10 = vpop.f32.mrf.mxu1 }
 0xa81   :  { %v2067_v29 = vadd.f32 %v2219_v24, %v2066_v10 }
 0xa82   :  { %v2780_v62 = vpop.f32.mrf.mxu1 }
 0xa83   :  { %2070 = vst [vmem:[%s3542_s12] sm:$0xff] %v2067_v29 }

</bundles_post_ra>
